<compile_context>
chip_gen: v7x
topology: tpu7x:2x2x1
jax: 0.10.0
libtpu: 0.0.40
codegen_flags: <defaults>
</compile_context>

<pallas_src>
import functools
import math

import jax
import jax.numpy as jnp
from jax.experimental import pallas as pl
from jax.experimental.pallas import tpu as pltpu


_VMEM_LIMIT = 32 * 1024 * 1024   # safe on v5e/v6e (128 MiB) and v7x (64 MiB)


# --------------------------------------------------------------------------
# tiling helpers
# --------------------------------------------------------------------------
def _round_up(x, m):
    return (x + m - 1) // m * m


def _choose_tm(m, target=256):
    """Token tile: multiple of 8, preferably a divisor of M (no padding pass),
    preferably giving >= 2 grid steps.  target=256 fits v7x; v6e could use 512."""
    if m % 8 == 0:
        divisors = [t for t in range(8, min(target, m) + 1, 8) if m % t == 0]
        two_step = [t for t in divisors if m // t >= 2]
        if two_step:
            return max(two_step)
        if divisors:
            return max(divisors)
    # fallback: pad M up to a multiple of tm
    if m <= 16:
        return 8
    tm = min(target, _round_up(m, 8) // 2)
    return max(8, (tm // 8) * 8)


def _choose_tf(d_ff, target=1024):
    """d_ff reduction tile: multiple of 128 that divides d_ff (or full d_ff)."""
    if d_ff % 128 != 0 or d_ff <= 128:
        return d_ff
    tf = (min(target, d_ff) // 128) * 128
    while d_ff % tf != 0:
        tf -= 128
    return tf


def _pad_rows(a, m_pad):
    m = a.shape[0]
    if m == m_pad:
        return a
    return jnp.pad(a, ((0, m_pad - m), (0, 0)))


# --------------------------------------------------------------------------
# Kernel 1: fused LayerNorm(1) + QKV projection (bf16 output)
# --------------------------------------------------------------------------
def _ln_qkv_kernel(x_ref, g_ref, b_ref, w_ref, bias_ref, o_ref, *, eps, feat):
    x = x_ref[...]                                             # (tm, D) f32
    mean = jnp.mean(x, axis=-1, keepdims=True)
    xc = x - mean
    var = jnp.sum(xc * xc, axis=-1, keepdims=True) / (feat - 1)  # torch.std (unbiased)
    inv = pl.reciprocal(jnp.sqrt(var) + eps)                   # EUP, not a (tm,D) divide
    n = g_ref[...] * (xc * inv) + b_ref[...]
    acc = jnp.dot(n.astype(jnp.bfloat16), w_ref[...],
                  preferred_element_type=jnp.float32)
    o_ref[...] = (acc + bias_ref[...]).astype(o_ref.dtype)     # bf16 store


# --------------------------------------------------------------------------
# Kernel 2: per-batch attention (all heads) + output projection + residual
# --------------------------------------------------------------------------
def _attn_proj_res_kernel(q_ref, k_ref, v_ref, mb_ref, x_ref, wo_ref, bo_ref,
                          o_ref, *, n_heads, scale):
    q = q_ref[...]                                             # (H, S, dk) bf16
    k = k_ref[...]
    v = v_ref[...]
    s = jnp.einsum("hqd,hkd->hqk", q, k,
                   preferred_element_type=jnp.float32)         # (H, S, S) f32
    s = s * scale + mb_ref[...][None]                          # additive mask bias
    s = s - jnp.max(s, axis=-1, keepdims=True)
    p = jnp.exp(s)
    p = p * pl.reciprocal(jnp.sum(p, axis=-1, keepdims=True), approx=True)
    # TODO(synk): attention-prob dropout skipped (eval mode).
    ctx = jnp.einsum("hqk,hkd->hqd", p.astype(jnp.bfloat16), v,
                     preferred_element_type=jnp.float32)       # (H, S, dk) f32

    wo = wo_ref[...]                                           # (H, dk, D) bf16
    seq = q.shape[1]
    d_model = x_ref.shape[-1]
    y = jnp.zeros((seq, d_model), jnp.float32)
    for h in range(n_heads):                                   # static unroll
        y = y + jnp.dot(ctx[h].astype(jnp.bfloat16), wo[h],
                        preferred_element_type=jnp.float32)
    o_ref[...] = (x_ref[...] + y + bo_ref[...]).astype(o_ref.dtype)


# --------------------------------------------------------------------------
# Kernel 3: fused LayerNorm(2) + FFN (d_ff-tiled, f32 accumulator) + residual
# --------------------------------------------------------------------------
def _ln_ffn_kernel(x_ref, g_ref, b_ref, w1_ref, b1_ref, w2_ref, b2_ref, o_ref,
                   n_scratch, acc_scratch, *, eps, feat):
    kk = pl.program_id(1)

    @pl.when(kk == 0)
    def _():
        x = x_ref[...]                                         # (tm, D) f32
        mean = jnp.mean(x, axis=-1, keepdims=True)
        xc = x - mean
        var = jnp.sum(xc * xc, axis=-1, keepdims=True) / (feat - 1)
        inv = pl.reciprocal(jnp.sqrt(var) + eps)
        n = g_ref[...] * (xc * inv) + b_ref[...]
        n_scratch[...] = n.astype(jnp.bfloat16)                # LN computed once per tile
        acc_scratch[...] = jnp.zeros_like(acc_scratch)

    h = jnp.dot(n_scratch[...], w1_ref[...],
                preferred_element_type=jnp.float32) + b1_ref[...]
    h = jnp.maximum(h, 0.0)                                    # ReLU; dropout == identity
    acc_scratch[...] += jnp.dot(h.astype(jnp.bfloat16), w2_ref[...],
                                preferred_element_type=jnp.float32)

    @pl.when(kk == pl.num_programs(1) - 1)
    def _():
        # b2 and residual added once at finalize.
        o_ref[...] = (x_ref[...] + acc_scratch[...] + b2_ref[...]).astype(o_ref.dtype)


# --------------------------------------------------------------------------
# wrapper: full EncoderLayer forward
# --------------------------------------------------------------------------
@functools.partial(jax.jit, static_argnames=("n_heads", "eps", "tm", "tf"))
def encoder_layer(x, mask,
                  ln1_g, ln1_b, wqkv, bqkv, wo, bo,
                  ln2_g, ln2_b, w1, b1, w2, b2,
                  *, n_heads, eps=1e-6, tm=None, tf=None):
    B, S, D = x.shape
    assert D % n_heads == 0
    dk = D // n_heads
    d_ff = w1.shape[1]

    M = B * S
    tm = tm if tm is not None else _choose_tm(M)
    M_pad = _round_up(M, tm)
    nm = M_pad // tm

    tf = tf if tf is not None else _choose_tf(d_ff)
    assert d_ff % tf == 0
    nk = d_ff // tf

    # bf16 weights for the MXU; biases / LN params stay f32.
    wqkv_bf = wqkv.astype(jnp.bfloat16)
    wo_bf = wo.astype(jnp.bfloat16).reshape(n_heads, dk, D)   # head-major for in-kernel proj
    w1_bf = w1.astype(jnp.bfloat16)
    w2_bf = w2.astype(jnp.bfloat16)

    x2d = _pad_rows(x.reshape(M, D), M_pad)

    # ---------------- sublayer 0: LN1 + QKV projection (bf16 output) -------
    qkv = pl.pallas_call(
        functools.partial(_ln_qkv_kernel, eps=eps, feat=D),
        out_shape=jax.ShapeDtypeStruct((M_pad, 3 * D), jnp.bfloat16),
        grid_spec=pltpu.PrefetchScalarGridSpec(
            num_scalar_prefetch=0,
            grid=(nm,),
            in_specs=[
                pl.BlockSpec((tm, D), lambda i: (i, 0)),        # x tile
                pl.BlockSpec((1, D), lambda i: (0, 0)),         # ln1 gamma
                pl.BlockSpec((1, D), lambda i: (0, 0)),         # ln1 beta
                pl.BlockSpec((D, 3 * D), lambda i: (0, 0)),     # Wqkv (bf16)
                pl.BlockSpec((1, 3 * D), lambda i: (0, 0)),     # bqkv
            ],
            out_specs=pl.BlockSpec((tm, 3 * D), lambda i: (i, 0)),
        ),
        compiler_params=pltpu.CompilerParams(
            dimension_semantics=("parallel",),
            vmem_limit_bytes=_VMEM_LIMIT),
        cost_estimate=pl.CostEstimate(
            flops=2 * M_pad * D * 3 * D, transcendentals=0,
            bytes_accessed=4 * M_pad * D + 2 * D * 3 * D + 2 * M_pad * 3 * D),
    )(x2d, ln1_g.reshape(1, D), ln1_b.reshape(1, D), wqkv_bf,
      bqkv.reshape(1, 3 * D))

    qkv = qkv if M_pad == M else qkv[:M]
    qkv = qkv.reshape(B, S, 3 * D)
    q, k, v = jnp.split(qkv, 3, axis=-1)

    def split_heads(t):
        return t.reshape(B, S, n_heads, dk).transpose(0, 2, 1, 3)   # (B,H,S,dk) bf16

    q, k, v = split_heads(q), split_heads(k), split_heads(v)

    # additive mask bias: 0 where attended, -1e9 where masked
    mask_bias = (mask.astype(jnp.float32) - 1.0) * 1e9             # (B, 1, S)

    # -------- sublayer 0: attention (all heads per step) + proj + residual --
    x1_3d = pl.pallas_call(
        functools.partial(_attn_proj_res_kernel, n_heads=n_heads,
                          scale=1.0 / math.sqrt(dk)),
        out_shape=jax.ShapeDtypeStruct((B, S, D), jnp.float32),
        grid_spec=pltpu.PrefetchScalarGridSpec(
            num_scalar_prefetch=0,
            grid=(B,),
            in_specs=[
                pl.BlockSpec((None, n_heads, S, dk), lambda b: (b, 0, 0, 0)),  # q
                pl.BlockSpec((None, n_heads, S, dk), lambda b: (b, 0, 0, 0)),  # k
                pl.BlockSpec((None, n_heads, S, dk), lambda b: (b, 0, 0, 0)),  # v
                pl.BlockSpec((None, 1, S), lambda b: (b, 0, 0)),               # mask bias
                pl.BlockSpec((None, S, D), lambda b: (b, 0, 0)),               # residual x
                pl.BlockSpec((n_heads, dk, D), lambda b: (0, 0, 0)),           # Wo (bf16)
                pl.BlockSpec((1, D), lambda b: (0, 0)),                        # bo
            ],
            out_specs=pl.BlockSpec((None, S, D), lambda b: (b, 0, 0)),
        ),
        compiler_params=pltpu.CompilerParams(
            dimension_semantics=("parallel",),
            vmem_limit_bytes=_VMEM_LIMIT),
        cost_estimate=pl.CostEstimate(
            flops=4 * B * n_heads * S * S * dk + 2 * B * S * D * D,
            transcendentals=B * n_heads * S * S,
            bytes_accessed=(3 * 2 * B * n_heads * S * dk + 4 * B * S * D
                            + 2 * D * D + 4 * B * S * D)),
    )(q, k, v, mask_bias, x, wo_bf, bo.reshape(1, D))

    x1 = _pad_rows(x1_3d.reshape(M, D), M_pad)

    # ---------------- sublayer 1: LN2 + FFN + residual ----------------------
    out2d = pl.pallas_call(
        functools.partial(_ln_ffn_kernel, eps=eps, feat=D),
        out_shape=jax.ShapeDtypeStruct((M_pad, D), jnp.float32),
        grid_spec=pltpu.PrefetchScalarGridSpec(
            num_scalar_prefetch=0,
            grid=(nm, nk),
            in_specs=[
                pl.BlockSpec((tm, D), lambda i, kk: (i, 0)),    # x1 tile (residual + LN src)
                pl.BlockSpec((1, D), lambda i, kk: (0, 0)),     # ln2 gamma
                pl.BlockSpec((1, D), lambda i, kk: (0, 0)),     # ln2 beta
                pl.BlockSpec((D, tf), lambda i, kk: (0, kk)),   # W1 tile (bf16)
                pl.BlockSpec((1, tf), lambda i, kk: (0, kk)),   # b1 tile
                pl.BlockSpec((tf, D), lambda i, kk: (kk, 0)),   # W2 tile (bf16)
                pl.BlockSpec((1, D), lambda i, kk: (0, 0)),     # b2
            ],
            out_specs=pl.BlockSpec((tm, D), lambda i, kk: (i, 0)),
            scratch_shapes=[pltpu.VMEM((tm, D), jnp.bfloat16),  # LN(x1) once per tile
                            pltpu.VMEM((tm, D), jnp.float32)],  # f32 accumulator
        ),
        compiler_params=pltpu.CompilerParams(
            dimension_semantics=("parallel", "arbitrary"),
            vmem_limit_bytes=_VMEM_LIMIT),
        cost_estimate=pl.CostEstimate(
            flops=4 * M_pad * D * d_ff, transcendentals=0,
            bytes_accessed=2 * 4 * M_pad * D + 2 * 2 * D * d_ff),
    )(x1, ln2_g.reshape(1, D), ln2_b.reshape(1, D), w1_bf,
      b1.reshape(1, d_ff), w2_bf, b2.reshape(1, D))

    out2d = out2d if M_pad == M else out2d[:M]
    return out2d.reshape(B, S, D)


# --------------------------------------------------------------------------
# pure-JAX reference (mirrors the kernel's bf16-matmul / f32-accumulate casts)
# --------------------------------------------------------------------------
def _reference_encoder_layer(x, mask, p, n_heads, eps=1e-6):
    B, S, D = x.shape
    dk = D // n_heads
    bf = jnp.bfloat16
    f32 = jnp.float32

    def ln(t, g, b):
        mean = t.mean(-1, keepdims=True)
        tc = t - mean
        var = (tc * tc).sum(-1, keepdims=True) / (D - 1)
        return g * tc / (jnp.sqrt(var) + eps) + b

    n1 = ln(x, p["ln1_g"], p["ln1_b"])
    qkv = jnp.einsum("bsd,df->bsf", n1.astype(bf), p["wqkv"].astype(bf),
                     preferred_element_type=f32) + p["bqkv"]
    q, k, v = jnp.split(qkv, 3, axis=-1)

    def split_heads(t):
        return t.reshape(B, S, n_heads, dk).transpose(0, 2, 1, 3)

    q, k, v = split_heads(q), split_heads(k), split_heads(v)
    s = jnp.einsum("bhqd,bhkd->bhqk", q.astype(bf), k.astype(bf),
                   preferred_element_type=f32) * (1.0 / math.sqrt(dk))
    m = mask[:, None, :, :]                                  # (B,1,1,S)
    s = jnp.where(m == 0.0, -1e9, s)
    s = s - s.max(-1, keepdims=True)
    pa = jnp.exp(s)
    pa = pa / pa.sum(-1, keepdims=True)
    ctx = jnp.einsum("bhqk,bhkd->bhqd", pa.astype(bf), v.astype(bf),
                     preferred_element_type=f32)
    ctx = ctx.transpose(0, 2, 1, 3).reshape(B, S, D)
    attn_out = jnp.einsum("bsd,de->bse", ctx.astype(bf), p["wo"].astype(bf),
                          preferred_element_type=f32) + p["bo"]
    x1 = x + attn_out

    n2 = ln(x1, p["ln2_g"], p["ln2_b"])
    h = jnp.einsum("bsd,df->bsf", n2.astype(bf), p["w1"].astype(bf),
                   preferred_element_type=f32) + p["b1"]
    h = jnp.maximum(h, 0.0)
    ffn = jnp.einsum("bsf,fd->bsd", h.astype(bf), p["w2"].astype(bf),
                     preferred_element_type=f32) + p["b2"]
    return x1 + ffn


if __name__ == "__main__":
    batch, seq, d_model, n_heads, d_ff = 2, 16, 128, 4, 512

    key = jax.random.PRNGKey(0)
    ks = jax.random.split(key, 13)

    x = jax.random.normal(ks[0], (batch, seq, d_model), dtype=jnp.float32)

    def lin(kw, fan_in, fan_out):
        return (jax.random.normal(kw, (fan_in, fan_out), dtype=jnp.float32)
                / jnp.sqrt(fan_in))

    # fused QKV weight (pre-transposed vs torch layout): (D, 3D)
    wqkv = jnp.concatenate([lin(ks[1], d_model, d_model),
                            lin(ks[2], d_model, d_model),
                            lin(ks[3], d_model, d_model)], axis=1)
    bqkv = 0.01 * jax.random.normal(ks[4], (3 * d_model,), dtype=jnp.float32)
    wo = lin(ks[5], d_model, d_model)
    bo = 0.01 * jax.random.normal(ks[6], (d_model,), dtype=jnp.float32)
    w1 = lin(ks[7], d_model, d_ff)
    b1 = 0.01 * jax.random.normal(ks[8], (d_ff,), dtype=jnp.float32)
    w2 = lin(ks[9], d_ff, d_model)
    b2 = 0.01 * jax.random.normal(ks[10], (d_model,), dtype=jnp.float32)

    ln1_g = 1.0 + 0.1 * jax.random.normal(ks[11], (d_model,), dtype=jnp.float32)
    ln1_b = 0.01 * jax.random.normal(ks[12], (d_model,), dtype=jnp.float32)
    ln2_g = 1.0 - 0.05 * jax.random.normal(ks[11], (d_model,), dtype=jnp.float32)
    ln2_b = 0.02 * jax.random.normal(ks[12], (d_model,), dtype=jnp.float32)

    # source mask (B, 1, S): batch 0 attends everywhere, batch 1 has 3 padded keys
    mask = jnp.ones((batch, 1, seq), jnp.float32)
    mask = mask.at[1, 0, seq - 3:].set(0.0)

    out = encoder_layer(x, mask, ln1_g, ln1_b, wqkv, bqkv, wo, bo,
                        ln2_g, ln2_b, w1, b1, w2, b2,
                        n_heads=n_heads, tf=256)   # tf=256 -> 2 d_ff reduction steps
    out = jax.block_until_ready(out)

    params = dict(ln1_g=ln1_g, ln1_b=ln1_b, wqkv=wqkv, bqkv=bqkv, wo=wo, bo=bo,
                  ln2_g=ln2_g, ln2_b=ln2_b, w1=w1, b1=b1, w2=w2, b2=b2)
    ref = _reference_encoder_layer(x, mask, params, n_heads)

    assert out.shape == x.shape
    max_err = float(jnp.max(jnp.abs(out - ref)))
    assert jnp.allclose(out, ref, atol=2e-2, rtol=2e-2), f"mismatch, max_err={max_err}"

    print("KERNEL_OK")
</pallas_src>

<mosaic_0001>
module attributes {stable_mosaic.version = 11 : i64} {
  func.func @_ln_qkv_kernel(%arg0: i32, %arg1: memref<16x128xf32, #tpu.memory_space<vmem>>, %arg2: memref<1x128xf32, #tpu.memory_space<vmem>>, %arg3: memref<1x128xf32, #tpu.memory_space<vmem>>, %arg4: memref<128x384xbf16, #tpu.memory_space<vmem>>, %arg5: memref<1x384xf32, #tpu.memory_space<vmem>>, %arg6: memref<16x384xbf16, #tpu.memory_space<vmem>>) attributes {dimension_semantics = [#tpu.dimension_semantics<parallel>], iteration_bounds = array<i64: 2>, scalar_prefetch = 0 : i64, scratch_operands = 0 : i64, tpu.core_type = #tpu.core_type<tc>, window_params = [{transform_indices = @transform_0, window_bounds = array<i64: 16, 128>}, {pipeline_mode = #tpu.pipeline_mode<synchronous>, transform_indices = @transform_1, window_bounds = array<i64: 1, 128>}, {pipeline_mode = #tpu.pipeline_mode<synchronous>, transform_indices = @transform_2, window_bounds = array<i64: 1, 128>}, {pipeline_mode = #tpu.pipeline_mode<synchronous>, transform_indices = @transform_3, window_bounds = array<i64: 128, 384>}, {pipeline_mode = #tpu.pipeline_mode<synchronous>, transform_indices = @transform_4, window_bounds = array<i64: 1, 384>}, {transform_indices = @transform_5, window_bounds = array<i64: 16, 384>}]} {
    %c0 = arith.constant 0 : index
    %c0_0 = arith.constant 0 : index
    %0 = vector.load %arg1[%c0, %c0_0] : memref<16x128xf32, #tpu.memory_space<vmem>>, vector<16x128xf32>
    %cst = arith.constant dense<0.000000e+00> : vector<16xf32>
    %1 = vector.multi_reduction <add>, %0, %cst [1] : vector<16x128xf32> to vector<16xf32>
    %2 = vector.shape_cast %1 : vector<16xf32> to vector<16x1xf32>
    %cst_1 = arith.constant 1.280000e+02 : f32
    %3 = vector.broadcast %cst_1 : f32 to vector<16x1xf32>
    %4 = arith.divf %2, %3 : vector<16x1xf32>
    %5 = vector.broadcast %4 : vector<16x1xf32> to vector<16x128xf32>
    %6 = arith.subf %0, %5 : vector<16x128xf32>
    %7 = arith.mulf %6, %6 : vector<16x128xf32>
    %cst_2 = arith.constant dense<0.000000e+00> : vector<16xf32>
    %8 = vector.multi_reduction <add>, %7, %cst_2 [1] : vector<16x128xf32> to vector<16xf32>
    %9 = vector.shape_cast %8 : vector<16xf32> to vector<16x1xf32>
    %cst_3 = arith.constant 1.270000e+02 : f32
    %10 = vector.broadcast %cst_3 : f32 to vector<16x1xf32>
    %11 = arith.divf %9, %10 : vector<16x1xf32>
    %12 = math.sqrt %11 : vector<16x1xf32>
    %cst_4 = arith.constant 9.99999997E-7 : f32
    %13 = vector.broadcast %cst_4 : f32 to vector<16x1xf32>
    %14 = arith.addf %12, %13 : vector<16x1xf32>
    %15 = tpu.reciprocal %14 : vector<16x1xf32> -> vector<16x1xf32>
    %c0_5 = arith.constant 0 : index
    %c0_6 = arith.constant 0 : index
    %16 = vector.load %arg2[%c0_5, %c0_6] : memref<1x128xf32, #tpu.memory_space<vmem>>, vector<1x128xf32>
    %17 = vector.broadcast %15 : vector<16x1xf32> to vector<16x128xf32>
    %18 = arith.mulf %6, %17 : vector<16x128xf32>
    %19 = vector.broadcast %16 : vector<1x128xf32> to vector<16x128xf32>
    %20 = arith.mulf %19, %18 : vector<16x128xf32>
    %c0_7 = arith.constant 0 : index
    %c0_8 = arith.constant 0 : index
    %21 = vector.load %arg3[%c0_7, %c0_8] : memref<1x128xf32, #tpu.memory_space<vmem>>, vector<1x128xf32>
    %22 = vector.broadcast %21 : vector<1x128xf32> to vector<16x128xf32>
    %23 = arith.addf %20, %22 : vector<16x128xf32>
    %24 = arith.truncf %23 : vector<16x128xf32> to vector<16x128xbf16>
    %c0_9 = arith.constant 0 : index
    %c0_10 = arith.constant 0 : index
    %25 = vector.load %arg4[%c0_9, %c0_10] : memref<128x384xbf16, #tpu.memory_space<vmem>>, vector<128x384xbf16>
    %cst_11 = arith.constant dense<0.000000e+00> : vector<16x384xf32>
    %26 = tpu.matmul %24, %25, %cst_11 {dimension_numbers = #tpu.dot_dimension_numbers<[1], [0], [0], [1], [0, 0, 1, 1], [], []>} : vector<16x128xbf16>, vector<128x384xbf16>, vector<16x384xf32> -> vector<16x384xf32>
    %c0_12 = arith.constant 0 : index
    %c0_13 = arith.constant 0 : index
    %27 = vector.load %arg5[%c0_12, %c0_13] : memref<1x384xf32, #tpu.memory_space<vmem>>, vector<1x384xf32>
    %28 = vector.broadcast %27 : vector<1x384xf32> to vector<16x384xf32>
    %29 = arith.addf %26, %28 : vector<16x384xf32>
    %30 = arith.truncf %29 : vector<16x384xf32> to vector<16x384xbf16>
    %c0_14 = arith.constant 0 : index
    %c0_15 = arith.constant 0 : index
    %31 = vector.load %arg6[%c0_14, %c0_15] : memref<16x384xbf16, #tpu.memory_space<vmem>>, vector<16x384xbf16>
    tpu.vector_store %arg6[%c0_14, %c0_15], %30 {strides = array<i32>} : memref<16x384xbf16, #tpu.memory_space<vmem>>, vector<16x384xbf16>,
    return
  }
  func.func @transform_0(%arg0: i32) -> (i32, i32) {
    %c0_i32 = arith.constant 0 : i32
    %c0_i32_0 = arith.constant 0 : i32
    return %arg0, %c0_i32 : i32, i32
  }
  func.func @transform_1(%arg0: i32) -> (i32, i32) {
    %c0_i32 = arith.constant 0 : i32
    %c0_i32_0 = arith.constant 0 : i32
    %c0_i32_1 = arith.constant 0 : i32
    return %c0_i32, %c0_i32_0 : i32, i32
  }
  func.func @transform_2(%arg0: i32) -> (i32, i32) {
    %c0_i32 = arith.constant 0 : i32
    %c0_i32_0 = arith.constant 0 : i32
    %c0_i32_1 = arith.constant 0 : i32
    return %c0_i32, %c0_i32_0 : i32, i32
  }
  func.func @transform_3(%arg0: i32) -> (i32, i32) {
    %c0_i32 = arith.constant 0 : i32
    %c0_i32_0 = arith.constant 0 : i32
    %c0_i32_1 = arith.constant 0 : i32
    return %c0_i32, %c0_i32_0 : i32, i32
  }
  func.func @transform_4(%arg0: i32) -> (i32, i32) {
    %c0_i32 = arith.constant 0 : i32
    %c0_i32_0 = arith.constant 0 : i32
    %c0_i32_1 = arith.constant 0 : i32
    return %c0_i32, %c0_i32_0 : i32, i32
  }
  func.func @transform_5(%arg0: i32) -> (i32, i32) {
    %c0_i32 = arith.constant 0 : i32
    %c0_i32_0 = arith.constant 0 : i32
    return %arg0, %c0_i32 : i32, i32
  }
}

module attributes {stable_mosaic.version = 11 : i64} {
  func.func @_attn_proj_res_kernel(%arg0: i32, %arg1: memref<1x4x16x32xbf16, #tpu.memory_space<vmem>>, %arg2: memref<1x4x16x32xbf16, #tpu.memory_space<vmem>>, %arg3: memref<1x4x16x32xbf16, #tpu.memory_space<vmem>>, %arg4: memref<1x1x16xf32, #tpu.memory_space<vmem>>, %arg5: memref<1x16x128xf32, #tpu.memory_space<vmem>>, %arg6: memref<4x32x128xbf16, #tpu.memory_space<vmem>>, %arg7: memref<1x128xf32, #tpu.memory_space<vmem>>, %arg8: memref<1x16x128xf32, #tpu.memory_space<vmem>>) attributes {dimension_semantics = [#tpu.dimension_semantics<parallel>], iteration_bounds = array<i64: 2>, scalar_prefetch = 0 : i64, scratch_operands = 0 : i64, tpu.core_type = #tpu.core_type<tc>, window_params = [{transform_indices = @transform_0, window_bounds = array<i64: 1, 4, 16, 32>}, {transform_indices = @transform_1, window_bounds = array<i64: 1, 4, 16, 32>}, {transform_indices = @transform_2, window_bounds = array<i64: 1, 4, 16, 32>}, {transform_indices = @transform_3, window_bounds = array<i64: 1, 1, 16>}, {transform_indices = @transform_4, window_bounds = array<i64: 1, 16, 128>}, {pipeline_mode = #tpu.pipeline_mode<synchronous>, transform_indices = @transform_5, window_bounds = array<i64: 4, 32, 128>}, {pipeline_mode = #tpu.pipeline_mode<synchronous>, transform_indices = @transform_6, window_bounds = array<i64: 1, 128>}, {transform_indices = @transform_7, window_bounds = array<i64: 1, 16, 128>}]} {
    %c0 = arith.constant 0 : index
    %c0_0 = arith.constant 0 : index
    %c0_1 = arith.constant 0 : index
    %c0_2 = arith.constant 0 : index
    %0 = vector.load %arg1[%c0, %c0_0, %c0_1, %c0_2] : memref<1x4x16x32xbf16, #tpu.memory_space<vmem>>, vector<1x4x16x32xbf16>
    %1 = vector.shape_cast %0 : vector<1x4x16x32xbf16> to vector<4x16x32xbf16>
    %c0_3 = arith.constant 0 : index
    %c0_4 = arith.constant 0 : index
    %c0_5 = arith.constant 0 : index
    %c0_6 = arith.constant 0 : index
    %2 = vector.load %arg2[%c0_3, %c0_4, %c0_5, %c0_6] : memref<1x4x16x32xbf16, #tpu.memory_space<vmem>>, vector<1x4x16x32xbf16>
    %3 = vector.shape_cast %2 : vector<1x4x16x32xbf16> to vector<4x16x32xbf16>
    %c0_7 = arith.constant 0 : index
    %c0_8 = arith.constant 0 : index
    %c0_9 = arith.constant 0 : index
    %c0_10 = arith.constant 0 : index
    %4 = vector.load %arg3[%c0_7, %c0_8, %c0_9, %c0_10] : memref<1x4x16x32xbf16, #tpu.memory_space<vmem>>, vector<1x4x16x32xbf16>
    %5 = vector.shape_cast %4 : vector<1x4x16x32xbf16> to vector<4x16x32xbf16>
    "tpu.trace_start"() <{level = 10 : i32, message = "hqd,hkd->hqk"}> : () -> ()
    %cst = arith.constant dense<0.000000e+00> : vector<4x16x16xf32>
    %6 = tpu.matmul %1, %3, %cst {dimension_numbers = #tpu.dot_dimension_numbers<[2], [2], [1], [1], [0, 0, 0, 1, 1, 1], [0], [0]>} : vector<4x16x32xbf16>, vector<4x16x32xbf16>, vector<4x16x16xf32> -> vector<4x16x16xf32>
    "tpu.trace_stop"() : () -> ()
    %cst_11 = arith.constant 0.176776692 : f32
    %7 = vector.broadcast %cst_11 : f32 to vector<4x16x16xf32>
    %8 = arith.mulf %6, %7 : vector<4x16x16xf32>
    %c0_12 = arith.constant 0 : index
    %c0_13 = arith.constant 0 : index
    %c0_14 = arith.constant 0 : index
    %9 = vector.load %arg4[%c0_12, %c0_13, %c0_14] : memref<1x1x16xf32, #tpu.memory_space<vmem>>, vector<1x1x16xf32>
    %10 = vector.shape_cast %9 : vector<1x1x16xf32> to vector<1x16xf32>
    %11 = vector.shape_cast %10 : vector<1x16xf32> to vector<1x1x16xf32>
    %12 = vector.broadcast %11 : vector<1x1x16xf32> to vector<4x16x16xf32>
    %13 = arith.addf %8, %12 : vector<4x16x16xf32>
    %cst_15 = arith.constant dense<0xFF800000> : vector<4x16xf32>
    %14 = vector.multi_reduction <maximumf>, %13, %cst_15 [2] : vector<4x16x16xf32> to vector<4x16xf32>
    %15 = vector.shape_cast %14 : vector<4x16xf32> to vector<4x16x1xf32>
    %16 = vector.broadcast %15 : vector<4x16x1xf32> to vector<4x16x16xf32>
    %17 = arith.subf %13, %16 : vector<4x16x16xf32>
    %18 = math.exp %17 : vector<4x16x16xf32>
    %cst_16 = arith.constant dense<0.000000e+00> : vector<4x16xf32>
    %19 = vector.multi_reduction <add>, %18, %cst_16 [2] : vector<4x16x16xf32> to vector<4x16xf32>
    %20 = vector.shape_cast %19 : vector<4x16xf32> to vector<4x16x1xf32>
    %21 = tpu.reciprocal %20 {approx = true} : vector<4x16x1xf32> -> vector<4x16x1xf32>
    %22 = vector.broadcast %21 : vector<4x16x1xf32> to vector<4x16x16xf32>
    %23 = arith.mulf %18, %22 : vector<4x16x16xf32>
    %24 = arith.truncf %23 : vector<4x16x16xf32> to vector<4x16x16xbf16>
    "tpu.trace_start"() <{level = 10 : i32, message = "hqk,hkd->hqd"}> : () -> ()
    %cst_17 = arith.constant dense<0.000000e+00> : vector<4x16x32xf32>
    %25 = tpu.matmul %24, %5, %cst_17 {dimension_numbers = #tpu.dot_dimension_numbers<[2], [1], [1], [2], [0, 0, 0, 1, 1, 2], [0], [0]>} : vector<4x16x16xbf16>, vector<4x16x32xbf16>, vector<4x16x32xf32> -> vector<4x16x32xf32>
    "tpu.trace_stop"() : () -> ()
    %c0_18 = arith.constant 0 : index
    %c0_19 = arith.constant 0 : index
    %c0_20 = arith.constant 0 : index
    %26 = vector.load %arg6[%c0_18, %c0_19, %c0_20] : memref<4x32x128xbf16, #tpu.memory_space<vmem>>, vector<4x32x128xbf16>
    %cst_21 = arith.constant 0.000000e+00 : f32
    %27 = vector.broadcast %cst_21 : f32 to vector<16x128xf32>
    %28 = vector.extract_strided_slice %25 {offsets = [0, 0, 0], sizes = [1, 16, 32], strides = [1, 1, 1]} : vector<4x16x32xf32> to vector<1x16x32xf32>
    %29 = vector.shape_cast %28 : vector<1x16x32xf32> to vector<16x32xf32>
    %30 = arith.truncf %29 : vector<16x32xf32> to vector<16x32xbf16>
    %31 = vector.extract_strided_slice %26 {offsets = [0, 0, 0], sizes = [1, 32, 128], strides = [1, 1, 1]} : vector<4x32x128xbf16> to vector<1x32x128xbf16>
    %32 = vector.shape_cast %31 : vector<1x32x128xbf16> to vector<32x128xbf16>
    %cst_22 = arith.constant dense<0.000000e+00> : vector<16x128xf32>
    %33 = tpu.matmul %30, %32, %cst_22 {dimension_numbers = #tpu.dot_dimension_numbers<[1], [0], [0], [1], [0, 0, 1, 1], [], []>} : vector<16x32xbf16>, vector<32x128xbf16>, vector<16x128xf32> -> vector<16x128xf32>
    %34 = arith.addf %27, %33 : vector<16x128xf32>
    %35 = vector.extract_strided_slice %25 {offsets = [1, 0, 0], sizes = [1, 16, 32], strides = [1, 1, 1]} : vector<4x16x32xf32> to vector<1x16x32xf32>
    %36 = vector.shape_cast %35 : vector<1x16x32xf32> to vector<16x32xf32>
    %37 = arith.truncf %36 : vector<16x32xf32> to vector<16x32xbf16>
    %38 = vector.extract_strided_slice %26 {offsets = [1, 0, 0], sizes = [1, 32, 128], strides = [1, 1, 1]} : vector<4x32x128xbf16> to vector<1x32x128xbf16>
    %39 = vector.shape_cast %38 : vector<1x32x128xbf16> to vector<32x128xbf16>
    %cst_23 = arith.constant dense<0.000000e+00> : vector<16x128xf32>
    %40 = tpu.matmul %37, %39, %cst_23 {dimension_numbers = #tpu.dot_dimension_numbers<[1], [0], [0], [1], [0, 0, 1, 1], [], []>} : vector<16x32xbf16>, vector<32x128xbf16>, vector<16x128xf32> -> vector<16x128xf32>
    %41 = arith.addf %34, %40 : vector<16x128xf32>
    %42 = vector.extract_strided_slice %25 {offsets = [2, 0, 0], sizes = [1, 16, 32], strides = [1, 1, 1]} : vector<4x16x32xf32> to vector<1x16x32xf32>
    %43 = vector.shape_cast %42 : vector<1x16x32xf32> to vector<16x32xf32>
    %44 = arith.truncf %43 : vector<16x32xf32> to vector<16x32xbf16>
    %45 = vector.extract_strided_slice %26 {offsets = [2, 0, 0], sizes = [1, 32, 128], strides = [1, 1, 1]} : vector<4x32x128xbf16> to vector<1x32x128xbf16>
    %46 = vector.shape_cast %45 : vector<1x32x128xbf16> to vector<32x128xbf16>
    %cst_24 = arith.constant dense<0.000000e+00> : vector<16x128xf32>
    %47 = tpu.matmul %44, %46, %cst_24 {dimension_numbers = #tpu.dot_dimension_numbers<[1], [0], [0], [1], [0, 0, 1, 1], [], []>} : vector<16x32xbf16>, vector<32x128xbf16>, vector<16x128xf32> -> vector<16x128xf32>
    %48 = arith.addf %41, %47 : vector<16x128xf32>
    %49 = vector.extract_strided_slice %25 {offsets = [3, 0, 0], sizes = [1, 16, 32], strides = [1, 1, 1]} : vector<4x16x32xf32> to vector<1x16x32xf32>
    %50 = vector.shape_cast %49 : vector<1x16x32xf32> to vector<16x32xf32>
    %51 = arith.truncf %50 : vector<16x32xf32> to vector<16x32xbf16>
    %52 = vector.extract_strided_slice %26 {offsets = [3, 0, 0], sizes = [1, 32, 128], strides = [1, 1, 1]} : vector<4x32x128xbf16> to vector<1x32x128xbf16>
    %53 = vector.shape_cast %52 : vector<1x32x128xbf16> to vector<32x128xbf16>
    %cst_25 = arith.constant dense<0.000000e+00> : vector<16x128xf32>
    %54 = tpu.matmul %51, %53, %cst_25 {dimension_numbers = #tpu.dot_dimension_numbers<[1], [0], [0], [1], [0, 0, 1, 1], [], []>} : vector<16x32xbf16>, vector<32x128xbf16>, vector<16x128xf32> -> vector<16x128xf32>
    %55 = arith.addf %48, %54 : vector<16x128xf32>
    %c0_26 = arith.constant 0 : index
    %c0_27 = arith.constant 0 : index
    %c0_28 = arith.constant 0 : index
    %56 = vector.load %arg5[%c0_26, %c0_27, %c0_28] : memref<1x16x128xf32, #tpu.memory_space<vmem>>, vector<1x16x128xf32>
    %57 = vector.shape_cast %56 : vector<1x16x128xf32> to vector<16x128xf32>
    %58 = arith.addf %57, %55 : vector<16x128xf32>
    %c0_29 = arith.constant 0 : index
    %c0_30 = arith.constant 0 : index
    %59 = vector.load %arg7[%c0_29, %c0_30] : memref<1x128xf32, #tpu.memory_space<vmem>>, vector<1x128xf32>
    %60 = vector.broadcast %59 : vector<1x128xf32> to vector<16x128xf32>
    %61 = arith.addf %58, %60 : vector<16x128xf32>
    %c0_31 = arith.constant 0 : index
    %c0_32 = arith.constant 0 : index
    %c0_33 = arith.constant 0 : index
    %62 = vector.load %arg8[%c0_31, %c0_32, %c0_33] : memref<1x16x128xf32, #tpu.memory_space<vmem>>, vector<1x16x128xf32>
    %63 = vector.shape_cast %62 : vector<1x16x128xf32> to vector<16x128xf32>
    %64 = vector.shape_cast %61 : vector<16x128xf32> to vector<1x16x128xf32>
    tpu.vector_store %arg8[%c0_31, %c0_32, %c0_33], %64 {strides = array<i32>} : memref<1x16x128xf32, #tpu.memory_space<vmem>>, vector<1x16x128xf32>,
    return
  }
  func.func @transform_0(%arg0: i32) -> (i32, i32, i32, i32) {
    %c0_i32 = arith.constant 0 : i32
    %c0_i32_0 = arith.constant 0 : i32
    %c0_i32_1 = arith.constant 0 : i32
    %c0_i32_2 = arith.constant 0 : i32
    return %arg0, %c0_i32, %c0_i32_0, %c0_i32_1 : i32, i32, i32, i32
  }
  func.func @transform_1(%arg0: i32) -> (i32, i32, i32, i32) {
    %c0_i32 = arith.constant 0 : i32
    %c0_i32_0 = arith.constant 0 : i32
    %c0_i32_1 = arith.constant 0 : i32
    %c0_i32_2 = arith.constant 0 : i32
    return %arg0, %c0_i32, %c0_i32_0, %c0_i32_1 : i32, i32, i32, i32
  }
  func.func @transform_2(%arg0: i32) -> (i32, i32, i32, i32) {
    %c0_i32 = arith.constant 0 : i32
    %c0_i32_0 = arith.constant 0 : i32
    %c0_i32_1 = arith.constant 0 : i32
    %c0_i32_2 = arith.constant 0 : i32
    return %arg0, %c0_i32, %c0_i32_0, %c0_i32_1 : i32, i32, i32, i32
  }
  func.func @transform_3(%arg0: i32) -> (i32, i32, i32) {
    %c0_i32 = arith.constant 0 : i32
    %c0_i32_0 = arith.constant 0 : i32
    %c0_i32_1 = arith.constant 0 : i32
    return %arg0, %c0_i32, %c0_i32_0 : i32, i32, i32
  }
  func.func @transform_4(%arg0: i32) -> (i32, i32, i32) {
    %c0_i32 = arith.constant 0 : i32
    %c0_i32_0 = arith.constant 0 : i32
    %c0_i32_1 = arith.constant 0 : i32
    return %arg0, %c0_i32, %c0_i32_0 : i32, i32, i32
  }
  func.func @transform_5(%arg0: i32) -> (i32, i32, i32) {
    %c0_i32 = arith.constant 0 : i32
    %c0_i32_0 = arith.constant 0 : i32
    %c0_i32_1 = arith.constant 0 : i32
    %c0_i32_2 = arith.constant 0 : i32
    return %c0_i32, %c0_i32_0, %c0_i32_1 : i32, i32, i32
  }
  func.func @transform_6(%arg0: i32) -> (i32, i32) {
    %c0_i32 = arith.constant 0 : i32
    %c0_i32_0 = arith.constant 0 : i32
    %c0_i32_1 = arith.constant 0 : i32
    return %c0_i32, %c0_i32_0 : i32, i32
  }
  func.func @transform_7(%arg0: i32) -> (i32, i32, i32) {
    %c0_i32 = arith.constant 0 : i32
    %c0_i32_0 = arith.constant 0 : i32
    %c0_i32_1 = arith.constant 0 : i32
    return %arg0, %c0_i32, %c0_i32_0 : i32, i32, i32
  }
}

module attributes {stable_mosaic.version = 11 : i64} {
  func.func @_ln_ffn_kernel(%arg0: i32, %arg1: i32, %arg2: memref<16x128xf32, #tpu.memory_space<vmem>>, %arg3: memref<1x128xf32, #tpu.memory_space<vmem>>, %arg4: memref<1x128xf32, #tpu.memory_space<vmem>>, %arg5: memref<128x256xbf16, #tpu.memory_space<vmem>>, %arg6: memref<1x256xf32, #tpu.memory_space<vmem>>, %arg7: memref<256x128xbf16, #tpu.memory_space<vmem>>, %arg8: memref<1x128xf32, #tpu.memory_space<vmem>>, %arg9: memref<16x128xf32, #tpu.memory_space<vmem>>, %arg10: memref<16x128xbf16, #tpu.memory_space<vmem>>, %arg11: memref<16x128xf32, #tpu.memory_space<vmem>>) attributes {dimension_semantics = [#tpu.dimension_semantics<parallel>, #tpu.dimension_semantics<arbitrary>], iteration_bounds = array<i64: 2, 2>, scalar_prefetch = 0 : i64, scratch_operands = 2 : i64, tpu.core_type = #tpu.core_type<tc>, window_params = [{transform_indices = @transform_0, window_bounds = array<i64: 16, 128>}, {pipeline_mode = #tpu.pipeline_mode<synchronous>, transform_indices = @transform_1, window_bounds = array<i64: 1, 128>}, {pipeline_mode = #tpu.pipeline_mode<synchronous>, transform_indices = @transform_2, window_bounds = array<i64: 1, 128>}, {transform_indices = @transform_3, window_bounds = array<i64: 128, 256>}, {transform_indices = @transform_4, window_bounds = array<i64: 1, 256>}, {transform_indices = @transform_5, window_bounds = array<i64: 256, 128>}, {pipeline_mode = #tpu.pipeline_mode<synchronous>, transform_indices = @transform_6, window_bounds = array<i64: 1, 128>}, {transform_indices = @transform_7, window_bounds = array<i64: 16, 128>}]} {
    %c0_i32 = arith.constant 0 : i32
    %0 = arith.cmpi eq, %arg1, %c0_i32 : i32
    %1 = arith.extui %0 : i1 to i32
    %c0_i32_0 = arith.constant 0 : i32
    %2 = arith.cmpi ne, %1, %c0_i32_0 : i32
    scf.if %2 {
      %c0_15 = arith.constant 0 : index
      %c0_16 = arith.constant 0 : index
      %20 = vector.load %arg2[%c0_15, %c0_16] : memref<16x128xf32, #tpu.memory_space<vmem>>, vector<16x128xf32>
      %cst_17 = arith.constant dense<0.000000e+00> : vector<16xf32>
      %21 = vector.multi_reduction <add>, %20, %cst_17 [1] : vector<16x128xf32> to vector<16xf32>
      %22 = vector.shape_cast %21 : vector<16xf32> to vector<16x1xf32>
      %cst_18 = arith.constant 1.280000e+02 : f32
      %23 = vector.broadcast %cst_18 : f32 to vector<16x1xf32>
      %24 = arith.divf %22, %23 : vector<16x1xf32>
      %25 = vector.broadcast %24 : vector<16x1xf32> to vector<16x128xf32>
      %26 = arith.subf %20, %25 : vector<16x128xf32>
      %27 = arith.mulf %26, %26 : vector<16x128xf32>
      %cst_19 = arith.constant dense<0.000000e+00> : vector<16xf32>
      %28 = vector.multi_reduction <add>, %27, %cst_19 [1] : vector<16x128xf32> to vector<16xf32>
      %29 = vector.shape_cast %28 : vector<16xf32> to vector<16x1xf32>
      %cst_20 = arith.constant 1.270000e+02 : f32
      %30 = vector.broadcast %cst_20 : f32 to vector<16x1xf32>
      %31 = arith.divf %29, %30 : vector<16x1xf32>
      %32 = math.sqrt %31 : vector<16x1xf32>
      %cst_21 = arith.constant 9.99999997E-7 : f32
      %33 = vector.broadcast %cst_21 : f32 to vector<16x1xf32>
      %34 = arith.addf %32, %33 : vector<16x1xf32>
      %35 = tpu.reciprocal %34 : vector<16x1xf32> -> vector<16x1xf32>
      %c0_22 = arith.constant 0 : index
      %c0_23 = arith.constant 0 : index
      %36 = vector.load %arg3[%c0_22, %c0_23] : memref<1x128xf32, #tpu.memory_space<vmem>>, vector<1x128xf32>
      %37 = vector.broadcast %35 : vector<16x1xf32> to vector<16x128xf32>
      %38 = arith.mulf %26, %37 : vector<16x128xf32>
      %39 = vector.broadcast %36 : vector<1x128xf32> to vector<16x128xf32>
      %40 = arith.mulf %39, %38 : vector<16x128xf32>
      %c0_24 = arith.constant 0 : index
      %c0_25 = arith.constant 0 : index
      %41 = vector.load %arg4[%c0_24, %c0_25] : memref<1x128xf32, #tpu.memory_space<vmem>>, vector<1x128xf32>
      %42 = vector.broadcast %41 : vector<1x128xf32> to vector<16x128xf32>
      %43 = arith.addf %40, %42 : vector<16x128xf32>
      %44 = arith.truncf %43 : vector<16x128xf32> to vector<16x128xbf16>
      %c0_26 = arith.constant 0 : index
      %c0_27 = arith.constant 0 : index
      %45 = vector.load %arg10[%c0_26, %c0_27] : memref<16x128xbf16, #tpu.memory_space<vmem>>, vector<16x128xbf16>
      tpu.vector_store %arg10[%c0_26, %c0_27], %44 {strides = array<i32>} : memref<16x128xbf16, #tpu.memory_space<vmem>>, vector<16x128xbf16>,
      %cst_28 = arith.constant 0.000000e+00 : f32
      %46 = vector.broadcast %cst_28 : f32 to vector<16x128xf32>
      %c0_29 = arith.constant 0 : index
      %c0_30 = arith.constant 0 : index
      %47 = vector.load %arg11[%c0_29, %c0_30] : memref<16x128xf32, #tpu.memory_space<vmem>>, vector<16x128xf32>
      tpu.vector_store %arg11[%c0_29, %c0_30], %46 {strides = array<i32>} : memref<16x128xf32, #tpu.memory_space<vmem>>, vector<16x128xf32>,
    } else {
    }
    %c0 = arith.constant 0 : index
    %c0_1 = arith.constant 0 : index
    %3 = vector.load %arg10[%c0, %c0_1] : memref<16x128xbf16, #tpu.memory_space<vmem>>, vector<16x128xbf16>
    %c0_2 = arith.constant 0 : index
    %c0_3 = arith.constant 0 : index
    %4 = vector.load %arg5[%c0_2, %c0_3] : memref<128x256xbf16, #tpu.memory_space<vmem>>, vector<128x256xbf16>
    %cst = arith.constant dense<0.000000e+00> : vector<16x256xf32>
    %5 = tpu.matmul %3, %4, %cst {dimension_numbers = #tpu.dot_dimension_numbers<[1], [0], [0], [1], [0, 0, 1, 1], [], []>} : vector<16x128xbf16>, vector<128x256xbf16>, vector<16x256xf32> -> vector<16x256xf32>
    %c0_4 = arith.constant 0 : index
    %c0_5 = arith.constant 0 : index
    %6 = vector.load %arg6[%c0_4, %c0_5] : memref<1x256xf32, #tpu.memory_space<vmem>>, vector<1x256xf32>
    %7 = vector.broadcast %6 : vector<1x256xf32> to vector<16x256xf32>
    %8 = arith.addf %5, %7 : vector<16x256xf32>
    %cst_6 = arith.constant 0.000000e+00 : f32
    %9 = vector.broadcast %cst_6 : f32 to vector<16x256xf32>
    %10 = arith.maximumf %8, %9 : vector<16x256xf32>
    %c0_7 = arith.constant 0 : index
    %c0_8 = arith.constant 0 : index
    %11 = vector.load %arg11[%c0_7, %c0_8] : memref<16x128xf32, #tpu.memory_space<vmem>>, vector<16x128xf32>
    %12 = arith.truncf %10 : vector<16x256xf32> to vector<16x256xbf16>
    %c0_9 = arith.constant 0 : index
    %c0_10 = arith.constant 0 : index
    %13 = vector.load %arg7[%c0_9, %c0_10] : memref<256x128xbf16, #tpu.memory_space<vmem>>, vector<256x128xbf16>
    %cst_11 = arith.constant dense<0.000000e+00> : vector<16x128xf32>
    %14 = tpu.matmul %12, %13, %cst_11 {dimension_numbers = #tpu.dot_dimension_numbers<[1], [0], [0], [1], [0, 0, 1, 1], [], []>} : vector<16x256xbf16>, vector<256x128xbf16>, vector<16x128xf32> -> vector<16x128xf32>
    %15 = arith.addf %11, %14 : vector<16x128xf32>
    %c0_12 = arith.constant 0 : index
    %c0_13 = arith.constant 0 : index
    %16 = vector.load %arg11[%c0_12, %c0_13] : memref<16x128xf32, #tpu.memory_space<vmem>>, vector<16x128xf32>
    tpu.vector_store %arg11[%c0_12, %c0_13], %15 {strides = array<i32>} : memref<16x128xf32, #tpu.memory_space<vmem>>, vector<16x128xf32>,
    %c1_i32 = arith.constant 1 : i32
    %17 = arith.cmpi eq, %arg1, %c1_i32 : i32
    %18 = arith.extui %17 : i1 to i32
    %c0_i32_14 = arith.constant 0 : i32
    %19 = arith.cmpi ne, %18, %c0_i32_14 : i32
    scf.if %19 {
      %c0_15 = arith.constant 0 : index
      %c0_16 = arith.constant 0 : index
      %20 = vector.load %arg2[%c0_15, %c0_16] : memref<16x128xf32, #tpu.memory_space<vmem>>, vector<16x128xf32>
      %c0_17 = arith.constant 0 : index
      %c0_18 = arith.constant 0 : index
      %21 = vector.load %arg11[%c0_17, %c0_18] : memref<16x128xf32, #tpu.memory_space<vmem>>, vector<16x128xf32>
      %22 = arith.addf %20, %21 : vector<16x128xf32>
      %c0_19 = arith.constant 0 : index
      %c0_20 = arith.constant 0 : index
      %23 = vector.load %arg8[%c0_19, %c0_20] : memref<1x128xf32, #tpu.memory_space<vmem>>, vector<1x128xf32>
      %24 = vector.broadcast %23 : vector<1x128xf32> to vector<16x128xf32>
      %25 = arith.addf %22, %24 : vector<16x128xf32>
      %c0_21 = arith.constant 0 : index
      %c0_22 = arith.constant 0 : index
      %26 = vector.load %arg9[%c0_21, %c0_22] : memref<16x128xf32, #tpu.memory_space<vmem>>, vector<16x128xf32>
      tpu.vector_store %arg9[%c0_21, %c0_22], %25 {strides = array<i32>} : memref<16x128xf32, #tpu.memory_space<vmem>>, vector<16x128xf32>,
    } else {
    }
    return
  }
  func.func @transform_0(%arg0: i32, %arg1: i32) -> (i32, i32) {
    %c0_i32 = arith.constant 0 : i32
    %c0_i32_0 = arith.constant 0 : i32
    return %arg0, %c0_i32 : i32, i32
  }
  func.func @transform_1(%arg0: i32, %arg1: i32) -> (i32, i32) {
    %c0_i32 = arith.constant 0 : i32
    %c0_i32_0 = arith.constant 0 : i32
    %c0_i32_1 = arith.constant 0 : i32
    return %c0_i32, %c0_i32_0 : i32, i32
  }
  func.func @transform_2(%arg0: i32, %arg1: i32) -> (i32, i32) {
    %c0_i32 = arith.constant 0 : i32
    %c0_i32_0 = arith.constant 0 : i32
    %c0_i32_1 = arith.constant 0 : i32
    return %c0_i32, %c0_i32_0 : i32, i32
  }
  func.func @transform_3(%arg0: i32, %arg1: i32) -> (i32, i32) {
    %c0_i32 = arith.constant 0 : i32
    %c0_i32_0 = arith.constant 0 : i32
    return %c0_i32, %arg1 : i32, i32
  }
  func.func @transform_4(%arg0: i32, %arg1: i32) -> (i32, i32) {
    %c0_i32 = arith.constant 0 : i32
    %c0_i32_0 = arith.constant 0 : i32
    return %c0_i32, %arg1 : i32, i32
  }
  func.func @transform_5(%arg0: i32, %arg1: i32) -> (i32, i32) {
    %c0_i32 = arith.constant 0 : i32
    %c0_i32_0 = arith.constant 0 : i32
    return %arg1, %c0_i32 : i32, i32
  }
  func.func @transform_6(%arg0: i32, %arg1: i32) -> (i32, i32) {
    %c0_i32 = arith.constant 0 : i32
    %c0_i32_0 = arith.constant 0 : i32
    %c0_i32_1 = arith.constant 0 : i32
    return %c0_i32, %c0_i32_0 : i32, i32
  }
  func.func @transform_7(%arg0: i32, %arg1: i32) -> (i32, i32) {
    %c0_i32 = arith.constant 0 : i32
    %c0_i32_0 = arith.constant 0 : i32
    return %arg0, %c0_i32 : i32, i32
  }
}

</mosaic_0001>

<bundles_post_ra>
// kernel: encoder_layer.3
= control target key start
LH: loop header
LB: loop body
LE: loop exit
PB: predicated region body
PF: predicated region fallthrough
CT: control target
= control target key end

     0   :  { %s800_s18 = smov 0   ;;  %s912_s0 = inlined_call_operand.vmem [shape: f32[32,128], index: 0, kind: input, shape index: {}]   ;;  %s913_s1 = inlined_call_operand.vmem [shape: f32[1,128], index: 1, kind: input, shape index: {}]   ;;  %s914_s2 = inlined_call_operand.vmem [shape: f32[1,128], index: 2, kind: input, shape index: {}]   ;;  %s915_s3 = inlined_call_operand.vmem [shape: bf16[128,384], index: 3, kind: input, shape index: {}]   ;;  %s916_s4 = inlined_call_operand.vmem [shape: f32[1,384], index: 4, kind: input, shape index: {}]   ;;  %s917_s5 = inlined_call_operand.vmem [shape: bf16[32,384], index: 5, kind: output, shape index: {}]  }
   0x1 LB: > { %s633_s19 = sadd.s32 4294967295, %s765_s18   ;;  %p637_p0 = scmp.ge.s32.totalorder %s765_s18, 1  ;;  %s765_s18 = sphi %s800_s18, %s15_s18  }
   0x2   : > { %p188_p1 = scmp.lt.s32.totalorder %s765_s18, 3 }
   0x4   : > { %p189_p2 = pnand %p637_p0, %p188_p1 }
   0x5   : > { %s638_s20 = sshll.u32 (!%p189_p2), %s633_s19, 1  ;;  %v719_v10 = vld [vmem:[%s915_s3 + $0x4] ss:$12 sps:$4 sm:$0xff] (!%p189_p2)   ;;  %v721_v11 = vld [vmem:[%s915_s3] ss:$12 sps:$4 sm:$0xff] (!%p189_p2)   ;;  %v767_v13 = vmov (!%p189_p2), 0.0   ;;  %v324_v63 = vlaneseq (!%p189_p2) }
   0x6   : > { %192 = sbr.rel (%p189_p2) target bundleno = 569 (0x239), region = 40  ;;  %p218_p3 = scmp.lt.s32.totalorder (!%p189_p2), %s638_s20, 3  ;;  %v722_v12 = vld [vmem:[%s915_s3 + $0x8] ss:$12 sps:$4 sm:$0xff] (!%p189_p2)   ;;  %467 = vmatprep.subr.bf16.mxu0 (!%p189_p2), %v719_v10  ;;  %687 = vmatprep.subr.bf16.mxu1 (!%p189_p2), %v767_v13  ;;  %v725_v15 = vld [vmem:[%s915_s3 + $0x18] ss:$12 sps:$4 sm:$0xff] (!%p189_p2)  }
   0x7   : > { %468 = vmatpush1.bf16.msra.mxu0 (!%p189_p2), %v721_v11  ;;  %688 = vmatpush3.bf16.msra.mxu1 (!%p189_p2), %v722_v12  ;;  %v723_v14 = vld [vmem:[%s915_s3 + $0x1c] ss:$12 sps:$4 sm:$0xff] (!%p189_p2)   ;;  %v726_v16 = vld [vmem:[%s915_s3 + $0x20] ss:$12 sps:$4 sm:$0xff] (!%p189_p2)   ;;  %v730_v19 = vld [vmem:[%s915_s3 + $0x38] ss:$12 sps:$4 sm:$0xff] (!%p189_p2)  }
   0x8   : > { %689 = vmatprep.subr.bf16.mxu1 (!%p189_p2), %v767_v13  ;;  %469 = vmatprep.subr.bf16.mxu0 (!%p189_p2), %v723_v14  ;;  %v727_v17 = vld [vmem:[%s915_s3 + $0x34] ss:$12 sps:$4 sm:$0xff] (!%p189_p2)   ;;  %v729_v18 = vld [vmem:[%s915_s3 + $0x30] ss:$12 sps:$4 sm:$0xff] (!%p189_p2)   ;;  %v731_v20 = vld [vmem:[%s915_s3 + $0x4c] ss:$12 sps:$4 sm:$0xff] (!%p189_p2)  }
   0x9   : > { %v733_v21 = vld [vmem:[%s915_s3 + $0x48] ss:$12 sps:$4 sm:$0xff] (!%p189_p2)   ;;  %v734_v22 = vld [vmem:[%s915_s3 + $0x50] ss:$12 sps:$4 sm:$0xff] (!%p189_p2)   ;;  %v737_v24 = vld [vmem:[%s915_s3 + $0x60] ss:$12 sps:$4 sm:$0xff] (!%p189_p2)  }
   0xa   : > { %v735_v23 = vld [vmem:[%s915_s3 + $0x64] ss:$12 sps:$4 sm:$0xff] (!%p189_p2)   ;;  %v738_v25 = vld [vmem:[%s915_s3 + $0x68] ss:$12 sps:$4 sm:$0xff] (!%p189_p2)   ;;  %v742_v28 = vld [vmem:[%s915_s3 + $0x80] ss:$12 sps:$4 sm:$0xff] (!%p189_p2)  }
   0xb   : > { %470 = vmatpush1.bf16.msra.mxu0 (!%p189_p2), %v725_v15  ;;  %690 = vmatpush3.bf16.msra.mxu1 (!%p189_p2), %v726_v16  ;;  %v739_v26 = vld [vmem:[%s915_s3 + $0x7c] ss:$12 sps:$4 sm:$0xff] (!%p189_p2)   ;;  %v741_v27 = vld [vmem:[%s915_s3 + $0x78] ss:$12 sps:$4 sm:$0xff] (!%p189_p2)   ;;  %v743_v29 = vld [vmem:[%s915_s3 + $0x94] ss:$12 sps:$4 sm:$0xff] (!%p189_p2)  }
   0xc   : > { %691 = vmatprep.subr.bf16.mxu1 (!%p189_p2), %v767_v13  ;;  %471 = vmatprep.subr.bf16.mxu0 (!%p189_p2), %v727_v17  ;;  %v768_v30 = vmov (!%p189_p2), 0   ;;  %vm769_vm0 = vmmov (!%p189_p2), 0   ;;  %v745_v31 = vld [vmem:[%s915_s3 + $0x90] ss:$12 sps:$4 sm:$0xff] (!%p189_p2)   ;;  %v746_v32 = vld [vmem:[%s915_s3 + $0x98] ss:$12 sps:$4 sm:$0xff] (!%p189_p2)  }
   0xd   : > { %s919_s20 = smov (!%p218_p3, %s638_s20), 3  ;;  %499 = vmatprep.mubr.bf16.mxu0 %v768_v30  ;;  %703 = vmatprep.mubr.msk.bf16.mxu1 %vm769_vm0, %v767_v13  ;;  %v747_v33 = vld [vmem:[%s915_s3 + $0xac] ss:$12 sps:$4 sm:$0xff]   ;;  %v749_v34 = vld [vmem:[%s915_s3 + $0xa8] ss:$12 sps:$4 sm:$0xff]  }
   0xe   : > { %s639_s21 = sshll.u32 %s919_s20, 3  ;;  %v750_v35 = vld [vmem:[%s915_s3 + $0xb0] ss:$12 sps:$4 sm:$0xff]   ;;  %v642_v54 = vld [vmem:[%s913_s1] ss:$0 sm:$0xff]  ;;  %s707_s8 = smul.u32 12, %s919_s20 }
   0xf   : > { %s221_s24 = scalar_lea.vmem %s912_s0, %s639_s21  ;;  %472 = vmatpush1.bf16.msra.mxu0 %v729_v18  ;;  %692 = vmatpush3.bf16.msra.mxu1 %v730_v19  ;;  %v643_v58 = vld [vmem:[%s914_s2] ss:$0 sm:$0xff] }
  0x10   : > { %v231_v0 = vld [vmem:[%s221_s24] sm:$0xff]  ;;  %v232_v1 = vld [vmem:[%s221_s24 + $0x8] sm:$0xff]  ;;  %693 = vmatprep.subr.bf16.mxu1 %v767_v13  ;;  %473 = vmatprep.subr.bf16.mxu0 %v731_v20  ;;  %s228_s11 = scalar_lea.vmem %s917_s5, %s707_s8 }
  0x11   : > { %233 = vadd.xlane.f32.xlu0 %v231_v0 }
  0x13   : > { %474 = vmatpush1.bf16.msra.mxu0 %v733_v21  ;;  %694 = vmatpush3.bf16.msra.mxu1 %v734_v22 }
  0x14   : > { %695 = vmatprep.subr.bf16.mxu1 %v767_v13  ;;  %475 = vmatprep.subr.bf16.mxu0 %v735_v23 }
  0x15   : > { %235 = vadd.xlane.f32.xlu0 %v232_v1 }
  0x17   : > { %476 = vmatpush1.bf16.msra.mxu0 %v737_v24  ;;  %696 = vmatpush3.bf16.msra.mxu1 %v738_v25 }
  0x18   : > { %477 = vmatprep.subr.bf16.mxu0 %v739_v26  ;;  %697 = vmatprep.subr.bf16.mxu1 %v767_v13 }
  0x1b   : > { %478 = vmatpush1.bf16.msra.mxu0 %v741_v27  ;;  %698 = vmatpush3.bf16.msra.mxu1 %v742_v28 }
  0x1c   : > { %479 = vmatprep.subr.bf16.mxu0 %v743_v29  ;;  %699 = vmatprep.subr.bf16.mxu1 %v767_v13 }
  0x1f   : > { %480 = vmatpush1.bf16.msra.mxu0 %v745_v31  ;;  %700 = vmatpush3.bf16.msra.mxu1 %v746_v32 }
  0x20   : > { %481 = vmatprep.subr.bf16.mxu0 %v747_v33  ;;  %701 = vmatprep.subr.bf16.mxu1 %v767_v13 }
  0x23   : > { %482 = vmatpush1.bf16.msra.mxu0 %v749_v34  ;;  %702 = vmatpush3.bf16.msra.mxu1 %v750_v35 }
  0x9e   : > { %v234_v2 = vpop.xlane.xlu0 %233 }
  0x9f   : > { %v238_v3 = vmul.f32 0.0078125, %v234_v2 }
  0xa1   : > { %v814_v4 = vsub.f32 %v231_v0, %v238_v3  ;;  %v325_v0 = vshrl.u32 %v324_v63, 7  ;;  %v322_v3 = vld [vmem:[%s916_s4] sm:$0x7] }
  0xa2   : > { %v236_v5 = vpop.xlane.xlu0 %235 }
  0xa3   : > { %v239_v6 = vmul.f32 0.0078125, %v236_v5  ;;  %v242_v7 = vmul.f32 %v814_v4, %v814_v4  ;;  %v334_v2 = vsub.s32 2, %v325_v0 }
  0xa5   : > { %v818_v8 = vsub.f32 %v232_v1, %v239_v6  ;;  %244 = vadd.xlane.f32.xlu1 %v242_v7  ;;  %v326_v1 = vsub.s32 0, %v325_v0  ;;  %v335_v6 = vrot.slane %v322_v3, %v334_v2 }
  0xa7   : > { %v243_v9 = vmul.f32 %v818_v8, %v818_v8  ;;  %v327_v5 = vrot.slane %v322_v3, %v326_v1 }
  0xa9   : > { %246 = vadd.xlane.f32.xlu1 %v243_v9 }
 0x132   : > { %v245_v36 = vpop.xlane.xlu1 %244 }
 0x133   : > { %v249_v37 = vmul.f32 0.007874016, %v245_v36 }
 0x135   : > { %751 = vrsqrt.f32 %v249_v37  ;;  %vm253_vm1 = vcmp.eq.f32.partialorder %v249_v37, inf  ;;  %v256_v42 = vand.u32 2147483648, %v249_v37  ;;  %vm255_vm2 = vcmp.eq.f32.partialorder %v249_v37, 0.0 }
 0x136   : > { %v247_v38 = vpop.xlane.xlu1 %246 }
 0x137   : > { %v250_v39 = vmul.f32 0.007874016, %v247_v38 }
 0x139   : > { %753 = vrsqrt.f32 %v250_v39  ;;  %vm260_vm3 = vcmp.eq.f32.partialorder %v250_v39, inf  ;;  %v263_v48 = vand.u32 2147483648, %v250_v39  ;;  %vm262_vm4 = vcmp.eq.f32.partialorder %v250_v39, 0.0 }
 0x13f   : > { %v752_v40 = vpop.eup %751 }
 0x140   : > { %v252_v41 = vmul.f32 %v752_v40, %v249_v37 }
 0x142   : > { %v254_v43 = vsel %vm253_vm1, %v249_v37, %v252_v41 }
 0x143   : > { %v754_v44 = vpop.eup %753  ;;  %v257_v45 = vsel %vm255_vm2, %v256_v42, %v254_v43 }
 0x144   : > { %v265_v46 = vadd.f32 1e-06, %v257_v45  ;;  %v259_v47 = vmul.f32 %v754_v44, %v250_v39 }
 0x146   : > { %v261_v49 = vsel %vm260_vm3, %v250_v39, %v259_v47  ;;  %755 = vrcp.f32 %v265_v46 }
 0x147   : > { %v264_v50 = vsel %vm262_vm4, %v263_v48, %v261_v49 }
 0x148   : > { %v266_v51 = vadd.f32 1e-06, %v264_v50 }
 0x14a   : > { %757 = vrcp.f32 %v266_v51 }
 0x150   : > { %v756_v52 = vpop.eup %755 }
 0x151   : > { %v270_v53 = vmul.f32 %v756_v52, %v814_v4  ;;  %v330_v4 = vsub.s32 1, %v325_v0 }
 0x153   : > { %v278_v57 = vmul.f32 %v642_v54, %v270_v53  ;;  %v331_v7 = vrot.slane %v322_v3, %v330_v4 }
 0x154   : > { %v758_v55 = vpop.eup %757 }
 0x155   : > { %v271_v56 = vmul.f32 %v758_v55, %v818_v8  ;;  %v287_v60 = vadd.f32 %v643_v58, %v278_v57 }
 0x157   : > { %v279_v59 = vmul.f32 %v642_v54, %v271_v56 }
 0x159   : > { %v288_v61 = vadd.f32 %v643_v58, %v279_v59 }
 0x15b   : > { %v289_v62 = vpack.c.bf16 %v288_v61, %v287_v60 }
 0x15d   : > { %500 = vmatmul.mubr.bf16.vlgmr.msra.gmra.mrb[0].mxu0 %v289_v62  ;;  %704 = vmatmul.mubr.bf16.vlgmr.msra.gmra.mrb[0].mxu1 %v289_v62 }
 0x230   : > { %v501_v8 = vpop.f32.mrb[0].mxu0  ;;  %v544_v9 = vpop.f32.mrb[0].mxu1 }
 0x231   : > { %v502_v10 = vadd.f32 %v501_v8, %v327_v5  ;;  %v545_v11 = vadd.f32 %v544_v9, %v335_v6  ;;  %v503_v12 = vpop.f32.mrb[1].mxu0  ;;  %v705_v13 = vpop.f32.mrb[1].mxu1 }
 0x232   : > { %v504_v14 = vadd.f32 %v503_v12, %v331_v7  ;;  %v505_v15 = vpop.f32.mrb[2].mxu0  ;;  %v547_v16 = vpop.f32.mrb[2].mxu1 }
 0x233   : > { %v675_v17 = vpack.c.bf16 %v545_v11, %v545_v11  ;;  %v506_v18 = vadd.f32 %v505_v15, %v327_v5  ;;  %v548_v19 = vadd.f32 %v547_v16, %v335_v6  ;;  %v507_v20 = vpop.f32.mrb[3].mxu0  ;;  %v706_v21 = vpop.f32.mrb[3].mxu1 }
 0x234   : > { %v674_v22 = vpack.c.bf16 %v504_v14, %v502_v10  ;;  %v508_v23 = vadd.f32 %v507_v20, %v331_v7 }
 0x235   : > { %572 = vst [vmem:[%s228_s11 + $0x8] sm:$0xf] %v675_v17  ;;  %v677_v24 = vpack.c.bf16 %v548_v19, %v548_v19 }
 0x236   : > { %571 = vst [vmem:[%s228_s11] sm:$0xff] %v674_v22  ;;  %v676_v25 = vpack.c.bf16 %v508_v23, %v506_v18 }
 0x237   : > { %574 = vst [vmem:[%s228_s11 + $0x14] sm:$0xf] %v677_v24 }
 0x238   : > { %573 = vst [vmem:[%s228_s11 + $0xc] sm:$0xff] %v676_v25 }
 0x239 PF: > { %s15_s18 = sadd.s32 1, %s765_s18  }
 0x23a   : > { %p12_p4 = scmp.ge.s32.totalorder %s15_s18, 4  }
 0x23c   :  { %14 = sbr.rel (!%p12_p4) target bundleno = 1 (0x1), region = 70 }

// kernel: encoder_layer.5
= control target key start
LH: loop header
LB: loop body
LE: loop exit
PB: predicated region body
PF: predicated region fallthrough
CT: control target
= control target key end

     0   :  { %s1641_s0 = inlined_call_operand.vmem [shape: f32[32,128], index: 0, kind: input, shape index: {}]   ;;  %s1642_s1 = inlined_call_operand.vmem [shape: f32[1,128], index: 1, kind: input, shape index: {}]   ;;  %s1643_s2 = inlined_call_operand.vmem [shape: f32[1,128], index: 2, kind: input, shape index: {}]   ;;  %s1644_s3 = inlined_call_operand.vmem [shape: bf16[128,512], index: 3, kind: input, shape index: {}]   ;;  %s1645_s4 = inlined_call_operand.vmem [shape: f32[1,512], index: 4, kind: input, shape index: {}]   ;;  %s1646_s5 = inlined_call_operand.vmem [shape: bf16[512,128], index: 5, kind: input, shape index: {}]   ;;  %s1647_s6 = inlined_call_operand.vmem [shape: f32[1,128], index: 6, kind: input, shape index: {}]   ;;  %s1648_s7 = inlined_call_operand.hbm [shape: f32[32,128], index: 7, kind: output, shape index: {}]  }
   0x1   :  { %1656 = sst [smem:[#allocation16_spill]] %s1644_s3 }
   0x2   :  { %12 = vsyncpa [#allocation6], 0 }
   0x3   :  { %14 = vsyncpa [#allocation6 + $0x1], 0  ;;  %s1373_s24 = smov 0   ;;  %s1375_s25 = smov 0  }
   0x4   :  { %s1377_s26 = smov 0   ;;  %s1379_s27 = smov 0  }
   0x5   :  { %s1381_s28 = smov 0   ;;  %s1383_s29 = smov 0  }
   0x6   :  { %s1385_s30 = smov 0   ;;  %s1387_s8 = smov 0  }
   0x7   :  { %s1389_s9 = smov 0   ;;  %s1391_s10 = smov 0  }
   0x8 LB: > { %1657 = sst [smem:[#allocation8_spill]] %s1298_s26  ;;  %s996_s11 = sadd.s32 4294967295, %s1326_s10   ;;  %s1326_s10 = sphi %s1391_s10, %s20_s10   ;;  %s1322_s9 = sphi %s1389_s9, %s1677_s9   ;;  %s1318_s8 = sphi %s1387_s8, %s1676_s8   ;;  %s1314_s30 = sphi %s1385_s30, %s1675_s30   ;;  %s1310_s29 = sphi %s1383_s29, %s1674_s29   ;;  %s1306_s28 = sphi %s1381_s28, %s1673_s28   ;;  %s1302_s27 = sphi %s1379_s27, %s1672_s27   ;;  %s1298_s26 = sphi %s1377_s26, %s1671_s26   ;;  %s1294_s25 = sphi %s1375_s25, %s1679_s25   ;;  %s1290_s24 = sphi %s1373_s24, %s1678_s24  }
   0x9   : > { %1658 = sst [smem:[#allocation9_spill]] %s1306_s28  ;;  %s997_s12 = sadd.s32 4294967294, %s1326_s10  }
   0xa   : > { %1659 = sst [smem:[#allocation10_spill]] %s1318_s8  ;;  %s29_s13 = sadd.s32 1, %s1318_s8 }
   0xb   : > { %1660 = sst [smem:[#allocation11_spill]] %s1322_s9  ;;  %s32_s14 = sadd.s32 1, %s1322_s9 }
   0xc   : > { %p30_p0 = scmp.ge.s32.totalorder %s29_s13, 2  ;;  %s107_s15 = sadd.s32 1, %s1306_s28 }
   0xd   : > { %p114_p1 = scmp.ne.s32.totalorder %s1306_s28, %s1302_s27  ;;  %p115_p2 = scmp.eq.s32.totalorder %s1326_s10, 0 }
   0xe   : > { %s1681_s13 = smov (%p30_p0, %s29_s13), 0  ;;  %s1683_s14 = smov (!%p30_p0, %s32_s14), %s1322_s9 }
   0xf   : > { %1661 = sst [smem:[#allocation12_spill]] %s1681_s13  ;;  %s104_s16 = ssub.s32 %s1318_s8, %s1681_s13 }
  0x10   : > { %p1436_p3 = por %p115_p2, %p114_p1  ;;  %p34_p4 = scmp.ge.s32.totalorder %s1683_s14, 2 }
  0x11   : > { %p105_p5 = scmp.eq.s32.totalorder %s104_s16, 0  ;;  %s206_s18 = sadd.s32 1, %s1298_s26 }
  0x12   : > { %p216_p6 = scmp.ne.s32.totalorder %s1298_s26, %s1294_s25  ;;  %s1685_s14 = smov (%p34_p4, %s1683_s14), 0 }
  0x13   : > { %1663 = sst [smem:[#allocation13_spill]] %s1685_s14  ;;  %s203_s20 = ssub.s32 %s1322_s9, %s1685_s14 }
  0x14   : > { %s1446_s19 = scalar_select %p105_p5, %s1306_s28, %s107_s15  }
  0x15   : > { %p217_p7 = scmp.eq.s32.totalorder %s996_s11, 3  ;;  %p204_p8 = scmp.eq.s32.totalorder %s203_s20, 0 }
  0x16   : > { %1664 = sst [smem:[#allocation14_spill]] %s1446_s19  ;;  %p222_p9 = scmp.ne.s32.totalorder %s1294_s25, %s1290_s24 }
  0x17   : > { %p1452_p10 = por %p217_p7, %p216_p6  ;;  %p223_p11 = scmp.eq.s32.totalorder %s997_s12, 3 }
  0x18   : > { %s1457_s22 = scalar_select %p204_p8, %s1298_s26, %s206_s18  }
  0x19   : > { %p1459_p12 = por %p223_p11, %p222_p9  ;;  %p999_p13 = scmp.ge.s32.totalorder %s1326_s10, 4 }
  0x1a   : > { %1666 = sst [smem:[#allocation15_spill]] %s1457_s22 }
  0x1b   : > { %248 = sbr.rel (%p999_p13) target bundleno = 52 (0x34), region = 28 }
  0x22   : > { %260 = sbr.rel (!%p1436_p3) target bundleno = 52 (0x34), region = 36  ;;  %s262_s11 = sand.u32 (%p1436_p3), 1, %s1306_s28  }
  0x23   : > { %s1053_s15 = sshll.u32 (%p1436_p3), %s1318_s8, 3  ;;  %s1000_s16 = sshll.u32 (%p1436_p3), %s262_s11, 7 }
  0x24   : > { %s1668_s3 = sld [smem:[#allocation16_spill]] (%p1436_p3)  ;;  %s264_s17 = scalar_lea.vmem (%p1436_p3), [#allocation4], %s1000_s16 }
  0x2a   : > { %s1471_s12 = scalar_lea.vmem %s1668_s3, %s1053_s15 }
  0x2b   : > { %v325_v0 = vld [vmem:[%s1471_s12] sm:$0xff]  ;;  %v327_v1 = vld [vmem:[%s1471_s12 + $0x10] sm:$0xff] }
  0x2c   : > { %v329_v2 = vld [vmem:[%s1471_s12 + $0x20] sm:$0xff]  ;;  %326 = vst [vmem:[%s264_s17] sm:$0xff] %v325_v0  ;;  %328 = vst [vmem:[%s264_s17 + $0x8] sm:$0xff] %v327_v1  ;;  %v331_v3 = vld [vmem:[%s1471_s12 + $0x30] sm:$0xff] }
  0x2d   : > { %330 = vst [vmem:[%s264_s17 + $0x10] sm:$0xff] %v329_v2  ;;  %v333_v4 = vld [vmem:[%s1471_s12 + $0x40] sm:$0xff]  ;;  %v335_v5 = vld [vmem:[%s1471_s12 + $0x50] sm:$0xff]  ;;  %332 = vst [vmem:[%s264_s17 + $0x18] sm:$0xff] %v331_v3 }
  0x2e   : > { %334 = vst [vmem:[%s264_s17 + $0x20] sm:$0xff] %v333_v4  ;;  %336 = vst [vmem:[%s264_s17 + $0x28] sm:$0xff] %v335_v5  ;;  %v337_v6 = vld [vmem:[%s1471_s12 + $0x60] sm:$0xff]  ;;  %v339_v7 = vld [vmem:[%s1471_s12 + $0x70] sm:$0xff] }
  0x2f   : > { %v341_v8 = vld [vmem:[%s1471_s12 + $0x80] sm:$0xff]  ;;  %338 = vst [vmem:[%s264_s17 + $0x30] sm:$0xff] %v337_v6  ;;  %340 = vst [vmem:[%s264_s17 + $0x38] sm:$0xff] %v339_v7  ;;  %v343_v9 = vld [vmem:[%s1471_s12 + $0x90] sm:$0xff] }
  0x30   : > { %342 = vst [vmem:[%s264_s17 + $0x40] sm:$0xff] %v341_v8  ;;  %v345_v10 = vld [vmem:[%s1471_s12 + $0xa0] sm:$0xff]  ;;  %v347_v11 = vld [vmem:[%s1471_s12 + $0xb0] sm:$0xff]  ;;  %344 = vst [vmem:[%s264_s17 + $0x48] sm:$0xff] %v343_v9 }
  0x31   : > { %346 = vst [vmem:[%s264_s17 + $0x50] sm:$0xff] %v345_v10  ;;  %348 = vst [vmem:[%s264_s17 + $0x58] sm:$0xff] %v347_v11  ;;  %v349_v12 = vld [vmem:[%s1471_s12 + $0xc0] sm:$0xff]  ;;  %v351_v13 = vld [vmem:[%s1471_s12 + $0xd0] sm:$0xff] }
  0x32   : > { %v353_v14 = vld [vmem:[%s1471_s12 + $0xe0] sm:$0xff]  ;;  %350 = vst [vmem:[%s264_s17 + $0x60] sm:$0xff] %v349_v12  ;;  %352 = vst [vmem:[%s264_s17 + $0x68] sm:$0xff] %v351_v13  ;;  %v355_v15 = vld [vmem:[%s1471_s12 + $0xf0] sm:$0xff] }
  0x33   : > { %354 = vst [vmem:[%s264_s17 + $0x70] sm:$0xff] %v353_v14  ;;  %356 = vst [vmem:[%s264_s17 + $0x78] sm:$0xff] %v355_v15 }
  0x34 PF: > { %p1003_p0 = scmp.ge.s32.totalorder %s1326_s10, 1  ;;  %p378_p1 = scmp.lt.s32.totalorder %s1326_s10, 5 }
  0x36   : > { %p379_p2 = pnand %p1003_p0, %p378_p1 }
  0x37   : > { %s385_s14 = sand.u32 (!%p379_p2), 1, %s1302_s27   ;;  %s1652_s18 = sand.u32 (!%p379_p2), 1, %s1294_s25  }
  0x38   : > { %382 = sbr.rel (%p379_p2) target bundleno = 913 (0x391), region = 82  ;;  %s1004_s11 = sshll.u32 (!%p379_p2), %s385_s14, 7 }
  0x39   : > { %s1005_s15 = sshll.u32 (!%p379_p2), %s1652_s18, 4  ;;  %s1006_s16 = sshll.u32 (!%p379_p2), %s1314_s30, 1 }
  0x3a   : > { %s1008_s20 = sshll.u32 (!%p379_p2), %s1310_s29, 1  ;;  %p431_p3 = scmp.lt.s32.totalorder (!%p379_p2), %s1006_s16, 3 }
  0x3b   : > { %p438_p4 = scmp.lt.s32.totalorder (!%p379_p2), %s1008_s20, 3  ;;  %s1009_s12 = sshll.u32 (!%p379_p2), %s1310_s29, 5 }
  0x3c   : > { %p443_p5 = scmp.lt.s32.totalorder (!%p379_p2), %s1009_s12, 63  ;;  %s1514_s26 = scalar_lea.vmem (!%p379_p2), [#allocation4], %s1004_s11 }
  0x3d   : > { %p1011_p6 = scmp.ne.s32.totalorder (!%p379_p2), %s1310_s29, 0 }
  0x3f   : > { %s1687_s16 = smov (!%p431_p3, %s1006_s16), 3  ;;  %s1689_s20 = smov (!%p438_p4, %s1008_s20), 3 }
  0x40   : > { %s1007_s17 = sshll.u32 %s1687_s16, 3  ;;  %s440_s18 = scalar_lea.vmem %s1645_s4, %s1689_s20  ;;  %v1328_v26 = vmov (!%p1011_p6), 0.0   ;;  %v1012_v45 = vld [vmem:[%s1642_s1] ss:$0 sm:$0xff] (!%p1011_p6) }
  0x41   : > { %s1503_s9 = scalar_lea.vmem %s1641_s0, %s1007_s17  ;;  %s1691_s12 = smov (!%p443_p5, %s1009_s12), 63  ;;  %514 = vst [vmem:[#allocation3] sm:$0xff] (!%p1011_p6), %v1328_v26  ;;  %515 = vst [vmem:[#allocation3 + $0x8] sm:$0xff] (!%p1011_p6), %v1328_v26  ;;  %v1013_v49 = vld [vmem:[%s1643_s2] ss:$0 sm:$0xff] (!%p1011_p6) }
  0x42   : > { %s1010_s8 = sshll.u32 %s1691_s12, 2  ;;  %s1516_s16 = scalar_lea.vmem [#allocation5], %s1005_s15  ;;  %v454_v16 = vld [vmem:[%s1503_s9] sm:$0xff] (!%p1011_p6)  ;;  %v455_v17 = vld [vmem:[%s1503_s9 + $0x8] sm:$0xff] (!%p1011_p6) }
  0x43   : > { %s1512_s22 = scalar_lea.vmem %s1646_s5, %s1010_s8  ;;  %453 = sbr.rel (%p1011_p6) target bundleno = 400 (0x190), region = 90  ;;  %456 = vadd.xlane.f32.xlu0 (!%p1011_p6), %v454_v16 }
  0x47   : > { %458 = vadd.xlane.f32.xlu0 (!%p1011_p6), %v455_v17 }
  0xd0   : > { %v457_v18 = vpop.xlane.xlu0 %456 }
  0xd1   : > { %v461_v19 = vmul.f32 0.0078125, %v457_v18 }
  0xd3   : > { %v463_v20 = vsub.f32 %v454_v16, %v461_v19 }
  0xd4   : > { %v459_v21 = vpop.xlane.xlu0 %458 }
  0xd5   : > { %v462_v22 = vmul.f32 0.0078125, %v459_v21  ;;  %v465_v23 = vmul.f32 %v463_v20, %v463_v20 }
  0xd7   : > { %v464_v24 = vsub.f32 %v455_v17, %v462_v22  ;;  %467 = vadd.xlane.f32.xlu1 %v465_v23 }
  0xd9   : > { %v466_v25 = vmul.f32 %v464_v24, %v464_v24 }
  0xdb   : > { %469 = vadd.xlane.f32.xlu1 %v466_v25 }
 0x164   : > { %v468_v27 = vpop.xlane.xlu1 %467 }
 0x165   : > { %v472_v28 = vmul.f32 0.007874016, %v468_v27 }
 0x167   : > { %1168 = vrsqrt.f32 %v472_v28  ;;  %vm476_vm0 = vcmp.eq.f32.partialorder %v472_v28, inf  ;;  %v479_v33 = vand.u32 2147483648, %v472_v28  ;;  %vm478_vm1 = vcmp.eq.f32.partialorder %v472_v28, 0.0 }
 0x168   : > { %v470_v29 = vpop.xlane.xlu1 %469 }
 0x169   : > { %v473_v30 = vmul.f32 0.007874016, %v470_v29 }
 0x16b   : > { %1170 = vrsqrt.f32 %v473_v30  ;;  %vm483_vm2 = vcmp.eq.f32.partialorder %v473_v30, inf  ;;  %v486_v39 = vand.u32 2147483648, %v473_v30  ;;  %vm485_vm3 = vcmp.eq.f32.partialorder %v473_v30, 0.0 }
 0x171   : > { %v1169_v31 = vpop.eup %1168 }
 0x172   : > { %v475_v32 = vmul.f32 %v1169_v31, %v472_v28 }
 0x174   : > { %v477_v34 = vsel %vm476_vm0, %v472_v28, %v475_v32 }
 0x175   : > { %v1171_v35 = vpop.eup %1170  ;;  %v480_v36 = vsel %vm478_vm1, %v479_v33, %v477_v34 }
 0x176   : > { %v488_v37 = vadd.f32 1e-06, %v480_v36  ;;  %v482_v38 = vmul.f32 %v1171_v35, %v473_v30 }
 0x178   : > { %1172 = vrcp.f32 %v488_v37  ;;  %v484_v40 = vsel %vm483_vm2, %v473_v30, %v482_v38 }
 0x179   : > { %v487_v41 = vsel %vm485_vm3, %v486_v39, %v484_v40 }
 0x17a   : > { %v489_v42 = vadd.f32 1e-06, %v487_v41 }
 0x17c   : > { %1174 = vrcp.f32 %v489_v42 }
 0x182   : > { %v1173_v43 = vpop.eup %1172 }
 0x183   : > { %v493_v44 = vmul.f32 %v1173_v43, %v463_v20 }
 0x185   : > { %v501_v47 = vmul.f32 %v1012_v45, %v493_v44 }
 0x186   : > { %v1175_v46 = vpop.eup %1174 }
 0x187   : > { %v494_v48 = vmul.f32 %v1175_v46, %v464_v24  ;;  %v510_v51 = vadd.f32 %v1013_v49, %v501_v47 }
 0x189   : > { %v502_v50 = vmul.f32 %v1012_v45, %v494_v48 }
 0x18b   : > { %v511_v52 = vadd.f32 %v1013_v49, %v502_v50 }
 0x18d   : > { %v512_v53 = vpack.c.bf16 %v511_v52, %v510_v51 }
 0x18f   : > { %513 = vst [vmem:[#allocation2] sm:$0xff] %v512_v53 }
 0x190 PF: > { %v1176_v54 = vld [vmem:[%s1514_s26 + $0x4] ss:$8 sps:$4 sm:$0xff]   ;;  %v1178_v55 = vld [vmem:[%s1514_s26] ss:$8 sps:$4 sm:$0xff]   ;;  %v1329_v56 = vmov 0   ;;  %v1202_v3 = vld [vmem:[%s1512_s22 + $0x48] sm:$0xff]   ;;  %v535_v24 = vlaneseq }
 0x191   : > { %657 = vmatprep.mubr.bf16.mxu0 %v1329_v56  ;;  %625 = vmatprep.subr.bf16.mxu0 %v1176_v54  ;;  %v1179_v57 = vld [vmem:[%s1514_s26 + $0x14] ss:$8 sps:$4 sm:$0xff]   ;;  %v1181_v58 = vld [vmem:[%s1514_s26 + $0x10] ss:$8 sps:$4 sm:$0xff]   ;;  %v1182_v59 = vld [vmem:[%s1514_s26 + $0x24] ss:$8 sps:$4 sm:$0xff]  }
 0x192   : > { %626 = vmatpush1.bf16.msra.mxu0 %v1178_v55  ;;  %v1184_v60 = vld [vmem:[%s1514_s26 + $0x20] ss:$8 sps:$4 sm:$0xff]   ;;  %v1185_v61 = vld [vmem:[%s1514_s26 + $0x34] ss:$8 sps:$4 sm:$0xff]   ;;  %v1187_v62 = vld [vmem:[%s1514_s26 + $0x30] ss:$8 sps:$4 sm:$0xff]  }
 0x193   : > { %627 = vmatprep.subr.bf16.mxu0 %v1179_v57  ;;  %v1188_v63 = vld [vmem:[%s1514_s26 + $0x44] ss:$8 sps:$4 sm:$0xff]   ;;  %v1190_v2 = vld [vmem:[%s1514_s26 + $0x40] ss:$8 sps:$4 sm:$0xff]   ;;  %v1203_v4 = vld [vmem:[%s1512_s22 + $0x8] sm:$0xff]   ;;  %v536_v25 = vshrl.u32 %v535_v24, 7 }
 0x194   : > { %v1200_v0 = vld [vmem:[%s1512_s22 + $0x40] sm:$0xff]   ;;  %v1204_v5 = vld [vmem:[%s1512_s22 + $0x50] sm:$0xff]   ;;  %v1206_v9 = vld [vmem:[%s1512_s22 + $0x58] sm:$0xff]   ;;  %p1046_p7 = scmp.ne.s32.totalorder %s1310_s29, 1 }
 0x195   : > { %v1201_v1 = vld [vmem:[%s1512_s22] sm:$0xff]   ;;  %1055 = vmatprep.subr.bf16.mxu1 %v1200_v0  ;;  %v1191_v6 = vld [vmem:[%s1514_s26 + $0x54] ss:$8 sps:$4 sm:$0xff]   ;;  %v1193_v7 = vld [vmem:[%s1514_s26 + $0x50] ss:$8 sps:$4 sm:$0xff]   ;;  %v537_v26 = vsub.s32 0, %v536_v25 }
 0x196   : > { %628 = vmatpush1.bf16.msra.mxu0 %v1181_v58  ;;  %1056 = vmatpush3.bf16.msra.mxu1 %v1201_v1  ;;  %v1205_v8 = vld [vmem:[%s1512_s22 + $0x10] sm:$0xff]   ;;  %v1194_v10 = vld [vmem:[%s1514_s26 + $0x64] ss:$8 sps:$4 sm:$0xff]   ;;  %v1196_v11 = vld [vmem:[%s1514_s26 + $0x60] ss:$8 sps:$4 sm:$0xff]   ;;  %v541_v28 = vsub.s32 1, %v536_v25 }
 0x197   : > { %629 = vmatprep.subr.bf16.mxu0 %v1182_v59  ;;  %1057 = vmatprep.subr.bf16.mxu1 %v1202_v3  ;;  %v1207_v12 = vld [vmem:[%s1512_s22 + $0x18] sm:$0xff]   ;;  %v1197_v13 = vld [vmem:[%s1514_s26 + $0x74] ss:$8 sps:$4 sm:$0xff]   ;;  %v1208_v14 = vld [vmem:[%s1512_s22 + $0x60] sm:$0xff]  }
 0x198   : > { %v1209_v15 = vld [vmem:[%s1512_s22 + $0x20] sm:$0xff]   ;;  %v1199_v16 = vld [vmem:[%s1514_s26 + $0x70] ss:$8 sps:$4 sm:$0xff]   ;;  %v1214_v22 = vld [vmem:[%s1512_s22 + $0x78] sm:$0xff]  }
 0x199   : > { %v1210_v17 = vld [vmem:[%s1512_s22 + $0x68] sm:$0xff]   ;;  %v516_v18 = vld [vmem:[#allocation2] sm:$0xff]  ;;  %v1212_v20 = vld [vmem:[%s1512_s22 + $0x70] sm:$0xff]  }
 0x19a   : > { %630 = vmatpush1.bf16.msra.mxu0 %v1184_v60  ;;  %1058 = vmatpush3.bf16.msra.mxu1 %v1203_v4  ;;  %v1211_v19 = vld [vmem:[%s1512_s22 + $0x28] sm:$0xff]   ;;  %v1213_v21 = vld [vmem:[%s1512_s22 + $0x30] sm:$0xff]   ;;  %v1215_v23 = vld [vmem:[%s1512_s22 + $0x38] sm:$0xff]  }
 0x19b   : > { %631 = vmatprep.subr.bf16.mxu0 %v1185_v61  ;;  %1059 = vmatprep.subr.bf16.mxu1 %v1204_v5  ;;  %v533_v27 = vld [vmem:[%s440_s18] sm:$0x3]  ;;  %v672_v46 = vld [vmem:[#allocation3] sm:$0xff]  ;;  %v673_v50 = vld [vmem:[#allocation3 + $0x8] sm:$0xff] }
 0x19c   : > { %v538_v29 = vrot.slane %v533_v27, %v537_v26  ;;  %v542_v30 = vrot.slane %v533_v27, %v541_v28  ;;  %v853_v55 = vld [vmem:[%s1503_s9] sm:$0xff] (!%p1046_p7)  ;;  %v854_v59 = vld [vmem:[%s1503_s9 + $0x8] sm:$0xff] (!%p1046_p7) }
 0x19d   : > { %v1047_v57 = vld [vmem:[%s1647_s6] ss:$0 sm:$0xff] (!%p1046_p7) }
 0x19e   : > { %632 = vmatpush1.bf16.msra.mxu0 %v1187_v62  ;;  %1060 = vmatpush3.bf16.msra.mxu1 %v1205_v8 }
 0x19f   : > { %633 = vmatprep.subr.bf16.mxu0 %v1188_v63  ;;  %1061 = vmatprep.subr.bf16.mxu1 %v1206_v9 }
 0x1a2   : > { %634 = vmatpush1.bf16.msra.mxu0 %v1190_v2  ;;  %1062 = vmatpush3.bf16.msra.mxu1 %v1207_v12 }
 0x1a3   : > { %635 = vmatprep.subr.bf16.mxu0 %v1191_v6  ;;  %1063 = vmatprep.subr.bf16.mxu1 %v1208_v14 }
 0x1a6   : > { %636 = vmatpush1.bf16.msra.mxu0 %v1193_v7  ;;  %1064 = vmatpush3.bf16.msra.mxu1 %v1209_v15 }
 0x1a7   : > { %637 = vmatprep.subr.bf16.mxu0 %v1194_v10  ;;  %1065 = vmatprep.subr.bf16.mxu1 %v1210_v17 }
 0x1aa   : > { %638 = vmatpush1.bf16.msra.mxu0 %v1196_v11  ;;  %1066 = vmatpush3.bf16.msra.mxu1 %v1211_v19 }
 0x1ab   : > { %639 = vmatprep.subr.bf16.mxu0 %v1197_v13  ;;  %1067 = vmatprep.subr.bf16.mxu1 %v1212_v20 }
 0x1ae   : > { %640 = vmatpush1.bf16.msra.mxu0 %v1199_v16  ;;  %1068 = vmatpush3.bf16.msra.mxu1 %v1213_v21 }
 0x1af   : > { %1069 = vmatprep.subr.bf16.mxu1 %v1214_v22 }
 0x1b1   : > { %658 = vmatmul.mubr.bf16.vlgmr.msra.gmra.mrb[0].mxu0 %v516_v18 }
 0x1b2   : > { %1070 = vmatpush3.bf16.msra.mxu1 %v1215_v23 }
 0x284   : > { %v659_v31 = vpop.f32.mrb[0].mxu0 }
 0x285   : > { %v660_v32 = vadd.f32 %v659_v31, %v538_v29  ;;  %v661_v33 = vpop.f32.mrb[1].mxu0 }
 0x286   : > { %v662_v34 = vadd.f32 %v661_v33, %v542_v30  ;;  %v663_v35 = vpop.f32.mrb[2].mxu0 }
 0x287   : > { %v664_v36 = vadd.f32 %v663_v35, %v538_v29  ;;  %v665_v37 = vpop.f32.mrb[3].mxu0  ;;  %v668_v39 = vmax.f32 %v660_v32, 0.0 }
 0x288   : > { %v666_v38 = vadd.f32 %v665_v37, %v542_v30  ;;  %v669_v41 = vmax.f32 %v662_v34, 0.0 }
 0x289   : > { %v670_v40 = vmax.f32 %v664_v36, 0.0 }
 0x28a   : > { %v671_v42 = vmax.f32 %v666_v38, 0.0 }
 0x28b   : > { %v674_v43 = vpack.c.bf16 %v670_v40, %v668_v39 }
 0x28c   : > { %v675_v44 = vpack.c.bf16 %v671_v42, %v669_v41 }
 0x28e   : > { %836 = vmatprep.mubr.bf16.mxu1 %v675_v44 }
 0x28f   : > { %837 = vmatmul.mubr.bf16.vlgmr.msra.gmra.mrb[0].mxu1 %v674_v43 }
 0x362   : > { %v1071_v45 = vpop.f32.mrb[0].mxu1 }
 0x363   : > { %v1072_v47 = vpop.f32.mrb[1].mxu1 }
 0x364   : > { %v1073_v48 = vadd.f32 %v1072_v47, %v1071_v45  ;;  %v1074_v49 = vpop.f32.mrb[2].mxu1  ;;  %852 = sbr.rel (%p1046_p7) target bundleno = 887 (0x377), region = 94 }
 0x365   : > { %v1075_v51 = vpop.f32.mrb[3].mxu1 }
 0x366   : > { %v845_v52 = vadd.f32 %v1073_v48, %v672_v46  ;;  %v1076_v53 = vadd.f32 %v1075_v51, %v1074_v49 }
 0x368   : > { %847 = vst [vmem:[#allocation3] sm:$0xff] %v845_v52  ;;  %v846_v54 = vadd.f32 %v1076_v53, %v673_v50 }
 0x36a   : > { %848 = vst [vmem:[#allocation3 + $0x8] sm:$0xff] %v846_v54 }
 0x36f   : > { %v855_v56 = vld [vmem:[#allocation3] sm:$0xff] }
 0x370   : > { %v857_v58 = vadd.f32 %v855_v56, %v853_v55 }
 0x371   : > { %v856_v60 = vld [vmem:[#allocation3 + $0x8] sm:$0xff] }
 0x372   : > { %v858_v61 = vadd.f32 %v856_v60, %v854_v59  ;;  %v866_v62 = vadd.f32 %v1047_v57, %v857_v58 }
 0x374   : > { %v867_v63 = vadd.f32 %v1047_v57, %v858_v61  ;;  %868 = vst [vmem:[%s1516_s16] sm:$0xff] %v866_v62 }
 0x376   : > { %869 = vst [vmem:[%s1516_s16 + $0x8] sm:$0xff] %v867_v63 }
 0x377 PF: > { %s1054_s29 = sshll.u32 %s1314_s30, 8  ;;  %s884_s12 = sshll.u32 %s1516_s16, 4  ;;  %s1579_s12 = int_to_ptr.vmem [resolvable:$true] %s884_s12 }
 0x378   : > { %s1576_s20 = scalar_lea.hbm %s1648_s7, %s1054_s29  ;;  %s1669_s9 = sand.u32 1, %s1294_s25  }
 0x379   : > { %s1583_s17 = scalar_lea.sflag [#allocation6], %s1669_s9  ;;  %s1216_s27 = scalar_lea.vmem %s1579_s12, 256 }
 0x37a   : > { %p1217_p8 = scmp.ne.s32.totalorder %s1579_s12, %s1216_s27  ;;  %s1330_s30 = smov [#allocation5]  }
 0x37b   : > { %s1220_s14 = sshll.u32 %s1330_s30, 4  ;;  %s1221_s14 = int_to_ptr.vmem [resolvable:$false] %s1220_s14 }
 0x37c   : > { %p1218_p9 = pnand %p1217_p8, %p1452_p10  ;;  %s1222_s3 = scalar_lea.vmem %s1221_s14, 512 }
 0x37d   : > { %p1223_p13 = scmp.lt.s32.totalorder %s1579_s12, %s1221_s14  ;;  %p1224_p0 = scmp.lt.s32.totalorder %s1222_s3, %s1216_s27 }
 0x37e   : > { %p1219_p11 = pneg %p1218_p9 }
 0x37f   : > { %p1225_p1 = por %p1224_p0, %p1223_p13 }
 0x381   : > { %p1226_p2 = pnand %p1225_p1, %p1219_p11 }
 0x383   : > { %1229 = shalt.err (!%p1226_p2)
}
 0x384   : > { %s1230_s16 = scalar_lea.hbm %s1576_s20, 256  ;;  %s1234_s13 = scalar_lea.hbm %s1648_s7, 512 }
 0x385   : > { %p1231_p3 = scmp.ne.s32.totalorder %s1576_s20, %s1230_s16  ;;  %p1235_p6 = scmp.lt.u32.totalorder %s1576_s20, %s1648_s7 }
 0x386   : > { %p1236_p7 = scmp.lt.u32.totalorder %s1234_s13, %s1230_s16  ;;  %p1238_p9 = scmp.lt.u32.totalorder %s1230_s16, %s1576_s20 }
 0x387   : > { %p1232_p4 = pnand %p1231_p3, %p1452_p10 }
 0x388   : > { %p1237_p8 = por %p1236_p7, %p1235_p6 }
 0x389   : > { %p1233_p5 = pneg %p1232_p4 }
 0x38a   : > { %p1239_p11 = por %p1238_p9, %p1237_p8 }
 0x38c   : > { %p1240_p13 = pnand %p1239_p11, %p1233_p5 }
 0x38e   : > { %1243 = shalt.err (!%p1240_p13)
}
 0x38f   : > { %s1331_s22 = smov 128   ;;  %s1332_s18 = smov 8  }
 0x390   : > { %1077 = dma.vmem_to_hbm [thread:$0]  (%p1452_p10), %s1579_s12, 256, %s1576_s20, %s1583_s17, %s1331_s22, %s1331_s22, %s1332_s18  }
 0x391 PF: > { %p1083_p0 = scmp.ge.s32.totalorder %s1326_s10, 2  ;;  %s899_s29 = sand.u32 1, %s1290_s24  }
 0x392   : > { %s900_s11 = scalar_lea.sflag [#allocation6], %s899_s29 }
 0x393   : > { %p1080_p1 = pnand %p1083_p0, %p1459_p12 }
 0x395   : > { %1285 = dma.done.wait (!%p1080_p1), %s900_s11, 256  }
 0x396   : > { %1287 = vsyncadd (!%p1080_p1), %s900_s11, 4294967040  ;;  %s20_s10 = sadd.s32 1, %s1326_s10   ;;  %s1670_s15 = sld [smem:[#allocation8_spill]] }
 0x397   : > { %p17_p2 = scmp.ge.s32.totalorder %s20_s10, 6   ;;  %s1671_s26 = sld [smem:[#allocation15_spill]] }
 0x398   : > { %s1672_s27 = sld [smem:[#allocation9_spill]]  ;;  %s1673_s28 = sld [smem:[#allocation14_spill]] }
 0x399   : > { %s1674_s29 = sld [smem:[#allocation10_spill]]  ;;  %s1675_s30 = sld [smem:[#allocation11_spill]] }
 0x39a   : > { %s1676_s8 = sld [smem:[#allocation12_spill]]  ;;  %s1677_s9 = sld [smem:[#allocation13_spill]] }
 0x39b   : > { %s1678_s24 = smov %s1294_s25  ;;  %19 = sbr.rel (!%p17_p2) target bundleno = 8 (0x8), region = 143 }
 0x39c   : > { %s1679_s25 = smov %s1670_s15 }
 0x3a2   :  { %905 = vsyncpa [#allocation6], 1 }
 0x3a3   :  { %907 = vsyncpa [#allocation6 + $0x1], 1 }

// kernel: encoder_layer.4
= control target key start
LH: loop header
LB: loop body
LE: loop exit
PB: predicated region body
PF: predicated region fallthrough
CT: control target
= control target key end

     0   :  { %s1562_s24 = smov 0   ;;  %s1701_s0 = inlined_call_operand.vmem [shape: bf16[2,4,16,32], index: 0, kind: input, shape index: {}]   ;;  %s1702_s1 = inlined_call_operand.vmem [shape: bf16[2,4,16,32], index: 1, kind: input, shape index: {}]   ;;  %s1703_s2 = inlined_call_operand.vmem [shape: bf16[2,4,16,32], index: 2, kind: input, shape index: {}]   ;;  %s1704_s3 = inlined_call_operand.vmem [shape: f32[2,1,16], index: 3, kind: input, shape index: {}]   ;;  %s1705_s4 = inlined_call_operand.vmem [shape: f32[2,16,128], index: 4, kind: input, shape index: {}]   ;;  %s1706_s5 = inlined_call_operand.vmem [shape: bf16[4,32,128], index: 5, kind: input, shape index: {}]   ;;  %s1707_s6 = inlined_call_operand.vmem [shape: f32[1,128], index: 6, kind: input, shape index: {}]   ;;  %s1708_s7 = inlined_call_operand.vmem [shape: f32[2,16,128], index: 7, kind: output, shape index: {}]  }
   0x1 LB: > { %s1286_s25 = sadd.s32 4294967295, %s1518_s24   ;;  %p1290_p0 = scmp.ge.s32.totalorder %s1518_s24, 1  ;;  %s1518_s24 = sphi %s1562_s24, %s17_s24  }
   0x2   : > { %p275_p1 = scmp.lt.s32.totalorder %s1518_s24, 3 }
   0x4   : > { %p276_p2 = pnand %p1290_p0, %p275_p1 }
   0x5   : > { %p325_p3 = scmp.lt.s32.totalorder (!%p276_p2), %s1286_s25, 1  ;;  %v1520_v0 = vmov (!%p276_p2), 0.0   ;;  %vm1521_vm0 = vmmov (!%p276_p2), 0   ;;  %vm388_vm1 = vcmask (!%p276_p2), 261120   ;;  %vm630_vm2 = vcmask (!%p276_p2), 130048  }
   0x6   : > { %279 = sbr.rel (%p276_p2) target bundleno = 1012 (0x3f4), region = 48  ;;  %1370 = vmatprep.subr.bf16.mxu0 (!%p276_p2), %v1520_v0  ;;  %1376 = vmatprep.subr.bf16.mxu1 (!%p276_p2), %v1520_v0 }
   0x7   : > { %1372 = vmatprep.mubr.msk.bf16.mxu0 (!%p276_p2), %vm1521_vm0, %v1520_v0  ;;  %1378 = vmatprep.mubr.msk.bf16.mxu1 (!%p276_p2), %vm1521_vm0, %v1520_v0 }
   0xd   : > { %s1710_s25 = smov (!%p325_p3, %s1286_s25), 1 }
   0xe   : > { %s1337_s26 = sshll.u32 %s1710_s25, 5  ;;  %s342_s15 = scalar_lea.vmem %s1704_s3, %s1710_s25 }
   0xf   : > { %s334_s29 = scalar_lea.vmem %s1702_s1, %s1337_s26  ;;  %s329_s9 = scalar_lea.vmem %s1701_s0, %s1337_s26  ;;  %v1313_v14 = vld [vmem:[%s342_s15] ss:$0 sm:$0xff] }
  0x10   : > { %v1460_v1 = vld [vmem:[%s334_s29] sm:$0xff]   ;;  %v1461_v2 = vld [vmem:[%s334_s29 + $0x8] sm:$0xff]   ;;  %v1464_v6 = vld [vmem:[%s334_s29 + $0x10] sm:$0xff]   ;;  %s1592_s12 = scalar_lea.vmem %s1703_s2, %s1337_s26  ;;  %s1340_s11 = sshll.u32 %s1710_s25, 4 }
  0x11   : > { %v393_v3 = vsel %vm388_vm1, %v1460_v1, 0  ;;  %v450_v4 = vsel %vm388_vm1, %v1461_v2, 0  ;;  %v1462_v5 = vld [vmem:[%s329_s9] sm:$0xff]   ;;  %v1465_v7 = vld [vmem:[%s334_s29 + $0x18] sm:$0xff]   ;;  %v1463_v8 = vld [vmem:[%s329_s9 + $0x8] sm:$0xff]   ;;  %v507_v9 = vsel %vm388_vm1, %v1464_v6, 0  ;;  %s347_s14 = scalar_lea.vmem %s1705_s4, %s1340_s11  ;;  %s352_s18 = scalar_lea.vmem %s1708_s7, %s1340_s11 }
  0x12   : > { %1371 = vmatpush3.bf16.xpose.msra.mxu0 %v393_v3  ;;  %1377 = vmatpush3.bf16.xpose.msra.mxu1 %v450_v4  ;;  %v564_v10 = vsel %vm388_vm1, %v1465_v7, 0  ;;  %v1466_v11 = vld [vmem:[%s329_s9 + $0x10] sm:$0xff]   ;;  %v1467_v12 = vld [vmem:[%s329_s9 + $0x18] sm:$0xff]  }
  0x13   : > { %1382 = vmatprep.subr.bf16.mxu0 %v1520_v0  ;;  %1388 = vmatprep.subr.bf16.mxu1 %v1520_v0 }
  0x19   : > { %1373 = vmatmul.mubr.msk.bf16.vlgmr.msra.gmra.mrb[0].mxu0 %vm388_vm1, %v1462_v5  ;;  %1379 = vmatmul.mubr.msk.bf16.vlgmr.msra.gmra.mrb[0].mxu1 %vm388_vm1, %v1463_v8 }
  0x1a   : > { %1383 = vmatpush3.bf16.xpose.msra.mxu0 %v507_v9  ;;  %1389 = vmatpush3.bf16.xpose.msra.mxu1 %v564_v10 }
  0x1b   : > { %1384 = vmatprep.mubr.msk.bf16.mxu0 %vm1521_vm0, %v1520_v0  ;;  %1390 = vmatprep.mubr.msk.bf16.mxu1 %vm1521_vm0, %v1520_v0 }
  0x1c   : > { %1394 = vmatprep.subr.bf16.mxu0 %v1520_v0  ;;  %1400 = vmatprep.subr.bf16.mxu1 %v1520_v0 }
  0x21   : > { %1385 = vmatmul.mubr.msk.bf16.vlgmr.msra.gmra.mrb[4].mxu0 %vm388_vm1, %v1466_v11  ;;  %1391 = vmatmul.mubr.msk.bf16.vlgmr.msra.gmra.mrb[4].mxu1 %vm388_vm1, %v1467_v12 }
  0x22   : > { %1396 = vmatprep.mubr.msk.bf16.mxu0 %vm1521_vm0, %v1520_v0  ;;  %1402 = vmatprep.mubr.msk.bf16.mxu1 %vm1521_vm0, %v1520_v0 }
  0xec   : > { %v429_v13 = vpop.f32.mrb[0].mxu0  ;;  %v486_v16 = vpop.f32.mrb[0].mxu1 }
  0xed   : > { %v607_v15 = vmul.f32 0.17677669, %v429_v13  ;;  %v1374_v17 = vpop.f32.mrb[1].mxu0  ;;  %v609_v18 = vmul.f32 0.17677669, %v486_v16  ;;  %v1380_v20 = vpop.f32.mrb[1].mxu1 }
  0xee   : > { %v432_v19 = vpop.f32.mrb[2].mxu0  ;;  %v489_v23 = vpop.f32.mrb[2].mxu1 }
  0xef   : > { %v608_v21 = vmul.f32 0.17677669, %v432_v19  ;;  %v1375_v22 = vpop.f32.mrb[3].mxu0  ;;  %v622_v24 = vadd.f32 %v1313_v14, %v607_v15  ;;  %v610_v25 = vmul.f32 0.17677669, %v489_v23  ;;  %v1381_v26 = vpop.f32.mrb[3].mxu1  ;;  %v624_v27 = vadd.f32 %v1313_v14, %v609_v18 }
  0xf1   : > { %v631_v28 = vsel %vm630_vm2, %v622_v24, -inf  ;;  %v623_v29 = vadd.f32 %v1313_v14, %v608_v21  ;;  %v637_v30 = vsel %vm630_vm2, %v624_v27, -inf  ;;  %v625_v31 = vadd.f32 %v1313_v14, %v610_v25 }
  0xf2   : > { %632 = vmax.xlane.f32.xlu0 %v631_v28  ;;  %638 = vmax.xlane.f32.xlu1 %v637_v30 }
  0xf3   : > { %v640_v33 = vsel %vm630_vm2, %v625_v31, -inf  ;;  %v634_v36 = vsel %vm630_vm2, %v623_v29, -inf }
  0xf4   : > { %v543_v32 = vpop.f32.mrb[4].mxu0  ;;  %v600_v37 = vpop.f32.mrb[4].mxu1 }
  0xf5   : > { %v611_v34 = vmul.f32 0.17677669, %v543_v32  ;;  %v1386_v35 = vpop.f32.mrb[5].mxu0  ;;  %v613_v39 = vmul.f32 0.17677669, %v600_v37  ;;  %v1392_v40 = vpop.f32.mrb[5].mxu1 }
  0xf6   : > { %635 = vmax.xlane.f32.xlu0 %v634_v36  ;;  %v546_v38 = vpop.f32.mrb[6].mxu0  ;;  %641 = vmax.xlane.f32.xlu1 %v640_v33  ;;  %v603_v43 = vpop.f32.mrb[6].mxu1  ;;  %v1469_v32 = vld [vmem:[%s1592_s12 + $0x8] sm:$0xff]  }
  0xf7   : > { %v612_v41 = vmul.f32 0.17677669, %v546_v38  ;;  %v1387_v42 = vpop.f32.mrb[7].mxu0  ;;  %v626_v44 = vadd.f32 %v1313_v14, %v611_v34  ;;  %v614_v45 = vmul.f32 0.17677669, %v603_v43  ;;  %v1393_v46 = vpop.f32.mrb[7].mxu1  ;;  %v628_v47 = vadd.f32 %v1313_v14, %v613_v39  ;;  %1401 = vmatpush3.bf16.msra.mxu1 %v1469_v32 }
  0xf8   : > { %1412 = vmatprep.subr.bf16.mxu1 %v1520_v0  ;;  %v1470_v46 = vld [vmem:[%s1592_s12 + $0x10] sm:$0xff]  }
  0xf9   : > { %v643_v48 = vsel %vm630_vm2, %v626_v44, -inf  ;;  %v627_v49 = vadd.f32 %v1313_v14, %v612_v41  ;;  %v629_v50 = vadd.f32 %v1313_v14, %v614_v45  ;;  %v649_v52 = vsel %vm630_vm2, %v628_v47, -inf }
  0xfa   : > { %644 = vmax.xlane.f32.xlu0 %v643_v48 }
  0xfb   : > { %v646_v51 = vsel %vm630_vm2, %v627_v49, -inf  ;;  %v652_v53 = vsel %vm630_vm2, %v629_v50, -inf }
  0xfc   : > { %647 = vmax.xlane.f32.xlu1 %v646_v51 }
  0xfe   : > { %650 = vmax.xlane.f32.xlu0 %v649_v52  ;;  %v1471_v52 = vld [vmem:[%s1592_s12 + $0x18] sm:$0xff]  }
 0x100   : > { %653 = vmax.xlane.f32.xlu1 %v652_v53 }
 0x17f   : > { %v633_v54 = vpop.xlane.xlu0 %632  ;;  %v639_v55 = vpop.xlane.xlu1 %638 }
 0x180   : > { %v655_v56 = vsub.f32 %v622_v24, %v633_v54  ;;  %v657_v57 = vsub.f32 %v624_v27, %v639_v55 }
 0x182   : > { %v663_v58 = vmul.f32 1.442695, %v655_v56  ;;  %v667_v59 = vmul.f32 1.442695, %v657_v57 }
 0x183   : > { %v636_v60 = vpop.xlane.xlu0 %635  ;;  %v642_v61 = vpop.xlane.xlu1 %641 }
 0x184   : > { %1480 = vpow2.f32 %v663_v58  ;;  %v656_v62 = vsub.f32 %v623_v29, %v636_v60  ;;  %v658_v63 = vsub.f32 %v625_v31, %v642_v61  ;;  %v1468_v31 = vld [vmem:[%s1592_s12] sm:$0xff]  }
 0x185   : > { %1482 = vpow2.f32 %v667_v59  ;;  %1395 = vmatpush3.bf16.msra.mxu0 %v1468_v31 }
 0x186   : > { %v665_v1 = vmul.f32 1.442695, %v656_v62  ;;  %v669_v2 = vmul.f32 1.442695, %v658_v63  ;;  %1406 = vmatprep.subr.bf16.mxu0 %v1520_v0  ;;  %v1472_v63 = vld [vmem:[%s1706_s5] sm:$0xff]  }
 0x187   : > { %v645_v3 = vpop.xlane.xlu0 %644 }
 0x188   : > { %1484 = vpow2.f32 %v665_v1  ;;  %v659_v4 = vsub.f32 %v626_v44, %v645_v3  ;;  %v1473_v1 = vld [vmem:[%s1706_s5 + $0x10] sm:$0xff]   ;;  %v1475_v3 = vld [vmem:[%s1706_s5 + $0x18] sm:$0xff]  }
 0x189   : > { %v648_v5 = vpop.xlane.xlu1 %647  ;;  %1486 = vpow2.f32 %v669_v2  ;;  %v1474_v2 = vld [vmem:[%s1706_s5 + $0x8] sm:$0xff]  }
 0x18a   : > { %v671_v6 = vmul.f32 1.442695, %v659_v4  ;;  %v660_v7 = vsub.f32 %v627_v49, %v648_v5 }
 0x18b   : > { %v651_v8 = vpop.xlane.xlu0 %650 }
 0x18c   : > { %1488 = vpow2.f32 %v671_v6  ;;  %v673_v9 = vmul.f32 1.442695, %v660_v7  ;;  %v661_v10 = vsub.f32 %v628_v47, %v651_v8  ;;  %v1477_v7 = vld [vmem:[%s1706_s5 + $0x30] sm:$0xff]  }
 0x18d   : > { %v654_v11 = vpop.xlane.xlu1 %653 }
 0x18e   : > { %v1481_v12 = vpop.eup %1480  ;;  %1490 = vpow2.f32 %v673_v9  ;;  %v675_v13 = vmul.f32 1.442695, %v661_v10  ;;  %v662_v14 = vsub.f32 %v629_v50, %v654_v11 }
 0x18f   : > { %v679_v15 = vsel %vm630_vm2, %v1481_v12, 0.0  ;;  %v1483_v16 = vpop.eup %1482 }
 0x190   : > { %1492 = vpow2.f32 %v675_v13  ;;  %v677_v17 = vmul.f32 1.442695, %v662_v14  ;;  %680 = vadd.xlane.f32.xlu0 %v679_v15  ;;  %v685_v19 = vsel %vm630_vm2, %v1483_v16, 0.0  ;;  %v1476_v13 = vld [vmem:[%s1706_s5 + $0x20] sm:$0xff]   ;;  %v1479_v14 = vld [vmem:[%s1706_s5 + $0x38] sm:$0xff]  }
 0x192   : > { %v1485_v18 = vpop.eup %1484  ;;  %1494 = vpow2.f32 %v677_v17 }
 0x193   : > { %v682_v20 = vsel %vm630_vm2, %v1485_v18, 0.0  ;;  %v1487_v21 = vpop.eup %1486 }
 0x194   : > { %686 = vadd.xlane.f32.xlu0 %v685_v19  ;;  %683 = vadd.xlane.f32.xlu1 %v682_v20  ;;  %v688_v24 = vsel %vm630_vm2, %v1487_v21, 0.0  ;;  %v1478_v20 = vld [vmem:[%s1706_s5 + $0x28] sm:$0xff]  }
 0x196   : > { %v1489_v22 = vpop.eup %1488 }
 0x197   : > { %v691_v23 = vsel %vm630_vm2, %v1489_v22, 0.0 }
 0x198   : > { %v1491_v25 = vpop.eup %1490  ;;  %692 = vadd.xlane.f32.xlu0 %v691_v23  ;;  %689 = vadd.xlane.f32.xlu1 %v688_v24 }
 0x199   : > { %v694_v28 = vsel %vm630_vm2, %v1491_v25, 0.0 }
 0x19a   : > { %v1493_v26 = vpop.eup %1492 }
 0x19b   : > { %v697_v27 = vsel %vm630_vm2, %v1493_v26, 0.0 }
 0x19c   : > { %v1495_v29 = vpop.eup %1494  ;;  %698 = vadd.xlane.f32.xlu0 %v697_v27  ;;  %695 = vadd.xlane.f32.xlu1 %v694_v28 }
 0x19d   : > { %v700_v30 = vsel %vm630_vm2, %v1495_v29, 0.0 }
 0x1a0   : > { %701 = vadd.xlane.f32.xlu1 %v700_v30 }
 0x21d   : > { %v681_v33 = vpop.xlane.xlu0 %680 }
 0x21e   : > { %1496 = vrcp.f32 %v681_v33 }
 0x221   : > { %v687_v34 = vpop.xlane.xlu0 %686  ;;  %v684_v35 = vpop.xlane.xlu1 %683 }
 0x222   : > { %1498 = vrcp.f32 %v684_v35 }
 0x223   : > { %1500 = vrcp.f32 %v687_v34 }
 0x225   : > { %v693_v36 = vpop.xlane.xlu0 %692  ;;  %v690_v37 = vpop.xlane.xlu1 %689 }
 0x226   : > { %1502 = vrcp.f32 %v690_v37 }
 0x227   : > { %1504 = vrcp.f32 %v693_v36 }
 0x228   : > { %v1497_v40 = vpop.eup %1496 }
 0x229   : > { %v699_v38 = vpop.xlane.xlu0 %698  ;;  %v696_v39 = vpop.xlane.xlu1 %695  ;;  %v711_v43 = vmul.f32 %v1497_v40, %v1481_v12 }
 0x22a   : > { %1506 = vrcp.f32 %v696_v39 }
 0x22b   : > { %1508 = vrcp.f32 %v699_v38 }
 0x22c   : > { %v1499_v41 = vpop.eup %1498 }
 0x22d   : > { %v702_v42 = vpop.xlane.xlu1 %701  ;;  %v712_v44 = vmul.f32 %v1499_v41, %v1485_v18  ;;  %v1501_v45 = vpop.eup %1500 }
 0x22e   : > { %1510 = vrcp.f32 %v702_v42  ;;  %v713_v49 = vmul.f32 %v1501_v45, %v1483_v16  ;;  %v1171_v42 = vld [vmem:[%s347_s14] sm:$0xff] }
 0x22f   : > { %v719_v47 = vpack.c.bf16 %v712_v44, %v711_v43 }
 0x230   : > { %v1503_v48 = vpop.eup %1502 }
 0x231   : > { %v714_v50 = vmul.f32 %v1503_v48, %v1487_v21  ;;  %1397 = vmatmul.mubr.msk.bf16.vlgmr.msra.gmra.mrb[8].mxu0 %vm630_vm2, %v719_v47  ;;  %v1505_v51 = vpop.eup %1504 }
 0x232   : > { %1407 = vmatpush3.bf16.msra.mxu0 %v1470_v46  ;;  %1408 = vmatprep.mubr.msk.bf16.mxu0 %vm1521_vm0, %v1520_v0  ;;  %v715_v56 = vmul.f32 %v1505_v51, %v1489_v22 }
 0x233   : > { %v720_v53 = vpack.c.bf16 %v714_v50, %v713_v49  ;;  %1418 = vmatprep.subr.bf16.mxu0 %v1520_v0  ;;  %v1334_v49 = vld [vmem:[%s1707_s6] ss:$0 sm:$0xff]  ;;  %v1172_v50 = vld [vmem:[%s347_s14 + $0x8] sm:$0xff] }
 0x234   : > { %v1507_v54 = vpop.eup %1506 }
 0x235   : > { %v1509_v55 = vpop.eup %1508  ;;  %v716_v57 = vmul.f32 %v1507_v54, %v1491_v25  ;;  %1403 = vmatmul.mubr.msk.bf16.vlgmr.msra.gmra.mrb[8].mxu1 %vm630_vm2, %v720_v53 }
 0x236   : > { %1413 = vmatpush3.bf16.msra.mxu1 %v1471_v52  ;;  %1414 = vmatprep.mubr.msk.bf16.mxu1 %vm1521_vm0, %v1520_v0  ;;  %v717_v60 = vmul.f32 %v1509_v55, %v1493_v26 }
 0x237   : > { %v721_v59 = vpack.c.bf16 %v716_v57, %v715_v56  ;;  %1426 = vmatprep.subr.bf16.mxu1 %v1520_v0 }
 0x238   : > { %v1511_v58 = vpop.eup %1510 }
 0x239   : > { %v718_v61 = vmul.f32 %v1511_v58, %v1495_v29  ;;  %1409 = vmatmul.mubr.msk.bf16.vlgmr.msra.gmra.mrb[12].mxu0 %vm630_vm2, %v721_v59 }
 0x23a   : > { %1422 = vmatprep.mubr.msk.bf16.mxu0 %vm1521_vm0, %v1520_v0  ;;  %1419 = vmatpush3.bf16.msra.mxu0 %v1473_v1 }
 0x23b   : > { %v722_v62 = vpack.c.bf16 %v718_v61, %v717_v60  ;;  %1420 = vmatprep.subr.bf16.mxu0 %v1520_v0 }
 0x23d   : > { %1415 = vmatmul.mubr.msk.bf16.vlgmr.msra.gmra.mrb[12].mxu1 %vm630_vm2, %v722_v62 }
 0x23e   : > { %1427 = vmatpush3.bf16.msra.mxu1 %v1472_v63  ;;  %1430 = vmatprep.mubr.msk.bf16.mxu1 %vm1521_vm0, %v1520_v0 }
 0x23f   : > { %1428 = vmatprep.subr.bf16.mxu1 %v1520_v0  ;;  %1421 = vmatpush3.bf16.msra.mxu0 %v1475_v3 }
 0x240   : > { %1434 = vmatprep.subr.bf16.mxu0 %v1520_v0 }
 0x242   : > { %1429 = vmatpush3.bf16.msra.mxu1 %v1474_v2 }
 0x243   : > { %1442 = vmatprep.subr.bf16.mxu1 %v1520_v0 }
 0x304   : > { %v766_v4 = vpop.f32.mrb[8].mxu0 }
 0x305   : > { %v1398_v5 = vpop.f32.mrb[9].mxu0 }
 0x306   : > { %v769_v6 = vpop.f32.mrb[10].mxu0 }
 0x307   : > { %v939_v8 = vpack.c.bf16 %v769_v6, %v766_v4  ;;  %v1399_v9 = vpop.f32.mrb[11].mxu0 }
 0x308   : > { %v816_v10 = vpop.f32.mrb[8].mxu1 }
 0x309   : > { %v1404_v11 = vpop.f32.mrb[9].mxu1  ;;  %1431 = vmatmul.mubr.msk.bf16.vlgmr.msra.gmra.mrb[16].mxu1 %vm388_vm1, %v939_v8 }
 0x30a   : > { %v819_v12 = vpop.f32.mrb[10].mxu1  ;;  %1443 = vmatpush3.bf16.msra.mxu1 %v1477_v7  ;;  %1446 = vmatprep.mubr.msk.bf16.mxu1 %vm1521_vm0, %v1520_v0 }
 0x30b   : > { %v940_v15 = vpack.c.bf16 %v819_v12, %v816_v10  ;;  %v1405_v16 = vpop.f32.mrb[11].mxu1  ;;  %1444 = vmatprep.subr.bf16.mxu1 %v1520_v0 }
 0x30c   : > { %v866_v17 = vpop.f32.mrb[12].mxu0 }
 0x30d   : > { %v1410_v18 = vpop.f32.mrb[13].mxu0  ;;  %1423 = vmatmul.mubr.msk.bf16.vlgmr.msra.gmra.mrb[16].mxu0 %vm388_vm1, %v940_v15 }
 0x30e   : > { %1435 = vmatpush3.bf16.msra.mxu0 %v1476_v13  ;;  %v869_v19 = vpop.f32.mrb[14].mxu0  ;;  %1445 = vmatpush3.bf16.msra.mxu1 %v1479_v14 }
 0x30f   : > { %v1053_v21 = vpack.c.bf16 %v869_v19, %v866_v17  ;;  %v1411_v22 = vpop.f32.mrb[15].mxu0  ;;  %1436 = vmatprep.subr.bf16.mxu0 %v1520_v0  ;;  %1438 = vmatprep.mubr.msk.bf16.mxu0 %vm1521_vm0, %v1520_v0 }
 0x310   : > { %v916_v23 = vpop.f32.mrb[12].mxu1 }
 0x311   : > { %v1416_v24 = vpop.f32.mrb[13].mxu1 }
 0x312   : > { %1437 = vmatpush3.bf16.msra.mxu0 %v1478_v20  ;;  %v919_v25 = vpop.f32.mrb[14].mxu1 }
 0x313   : > { %v1112_v26 = vpack.c.bf16 %v919_v25, %v916_v23  ;;  %v1417_v27 = vpop.f32.mrb[15].mxu1 }
 0x315   : > { %1439 = vmatmul.mubr.msk.bf16.vlgmr.msra.gmra.mrb[20].mxu0 %vm388_vm1, %v1053_v21  ;;  %1447 = vmatmul.mubr.msk.bf16.vlgmr.msra.gmra.mrb[20].mxu1 %vm388_vm1, %v1112_v26 }
 0x3dc   : > { %v1046_v28 = vpop.f32.mrb[16].mxu1 }
 0x3dd   : > { %v1432_v29 = vpop.f32.mrb[17].mxu1 }
 0x3de   : > { %v1049_v30 = vpop.f32.mrb[18].mxu1 }
 0x3df   : > { %v1433_v31 = vpop.f32.mrb[19].mxu1 }
 0x3e0   : > { %v990_v32 = vpop.f32.mrb[16].mxu0 }
 0x3e1   : > { %v1047_v33 = vadd.f32 %v1046_v28, %v990_v32  ;;  %v1424_v34 = vpop.f32.mrb[17].mxu0 }
 0x3e2   : > { %v993_v35 = vpop.f32.mrb[18].mxu0 }
 0x3e3   : > { %v1050_v0 = vadd.f32 %v1049_v30, %v993_v35  ;;  %v1425_v36 = vpop.f32.mrb[19].mxu0 }
 0x3e8   : > { %v1103_v37 = vpop.f32.mrb[20].mxu0  ;;  %v1162_v38 = vpop.f32.mrb[20].mxu1 }
 0x3e9   : > { %v1110_v39 = vadd.f32 %v1103_v37, %v1047_v33  ;;  %v1440_v40 = vpop.f32.mrb[21].mxu0  ;;  %v1448_v41 = vpop.f32.mrb[21].mxu1 }
 0x3ea   : > { %v1106_v43 = vpop.f32.mrb[22].mxu0  ;;  %v1165_v44 = vpop.f32.mrb[22].mxu1 }
 0x3eb   : > { %v1169_v45 = vadd.f32 %v1162_v38, %v1110_v39  ;;  %v1111_v46 = vadd.f32 %v1106_v43, %v1050_v0  ;;  %v1441_v47 = vpop.f32.mrb[23].mxu0  ;;  %v1449_v48 = vpop.f32.mrb[23].mxu1 }
 0x3ed   : > { %v1173_v51 = vadd.f32 %v1171_v42, %v1169_v45  ;;  %v1170_v52 = vadd.f32 %v1165_v44, %v1111_v46 }
 0x3ef   : > { %v1182_v53 = vadd.f32 %v1334_v49, %v1173_v51  ;;  %v1174_v54 = vadd.f32 %v1172_v50, %v1170_v52 }
 0x3f1   : > { %1184 = vst [vmem:[%s352_s18] sm:$0xff] %v1182_v53  ;;  %v1183_v55 = vadd.f32 %v1334_v49, %v1174_v54 }
 0x3f3   : > { %1185 = vst [vmem:[%s352_s18 + $0x8] sm:$0xff] %v1183_v55 }
 0x3f4 PF: > { %s17_s24 = sadd.s32 1, %s1518_s24  }
 0x3f5   : > { %p14_p4 = scmp.ge.s32.totalorder %s17_s24, 4  }
 0x3f7   :  { %16 = sbr.rel (!%p14_p4) target bundleno = 1 (0x1), region = 90 }

</bundles_post_ra>
